<compile_context>
chip_gen: v7x
topology: tpu7x:2x2x1
jax: 0.10.0
libtpu: 0.0.40
codegen_flags: <defaults>
</compile_context>

<pallas_src>
import numpy as np

import jax
import jax.numpy as jnp
from jax import lax
from jax.experimental import pallas as pl
from jax.experimental.pallas import tpu as pltpu

# ----------------------------- hyperparameters ------------------------------
N_EMBD = 384                 # matches the module's global n_embd
BLOCK_SIZE = 256             # matches the module's global block_size (T <= this)
HEAD_SIZE = 64               # typical head_size = n_embd // n_head (n_head=6)
HP = 128                     # head_size padded to one full lane register width
SCALE = HEAD_SIZE ** -0.5    # exactly 0.125 (power of two -> exact to fold)
NEG_INF = float("-inf")
# TODO(synk): nn.Dropout(0.2) on `wei` is identity at inference; training-mode
# RNG dropout is not implemented here.


# --------------------------------- kernel -----------------------------------
def head_kernel(x_ref, wqkv_ref, o_ref):
    """One grid step = `batch_tile` batch elements.

    x_ref    : [BT, T, C]      bf16 activations
    wqkv_ref : [C, 3*HP]       bf16 fused (scaled-Wq | Wk | Wv), each padded to 128
    o_ref    : [BT, T, HP]     f32 output (cols [HEAD_SIZE:HP] are exact zeros)
    """
    BT, T, C = x_ref.shape

    # Pack batch rows into the MXU M dimension for the fused QKV projection.
    x2d = x_ref[...].reshape(BT * T, C)                               # bf16
    qkv = jnp.dot(x2d, wqkv_ref[...],
                  preferred_element_type=jnp.float32)                 # [BT*T, 3*HP]
    qkv = qkv.reshape(BT, T, 3 * HP)

    # 128-lane-aligned slices (no sub-vreg extracts); scale already in Wq.
    q = qkv[:, :, 0 * HP:1 * HP].astype(jnp.bfloat16)
    k = qkv[:, :, 1 * HP:2 * HP].astype(jnp.bfloat16)
    v = qkv[:, :, 2 * HP:3 * HP].astype(jnp.bfloat16)

    # Causal (tril) mask, built in-kernel instead of DMA-ing a [T,T] buffer.
    row = lax.broadcasted_iota(jnp.int32, (T, T), 0)
    col = lax.broadcasted_iota(jnp.int32, (T, T), 1)
    causal = (row >= col)[None, :, :]

    # wei = q @ k^T  (padded lanes of q/k are zero -> contributes exactly 0).
    s = jnp.einsum("bqd,bkd->bqk", q, k,
                   preferred_element_type=jnp.float32)                # [BT, T, T]
    s = jnp.where(causal, s, NEG_INF)

    # Softmax in f32; exp on the EUP, denominator via approximate reciprocal
    # (EUP) instead of a VPU divide.
    s = s - jnp.max(s, axis=-1, keepdims=True)
    p = jnp.exp(s)
    p = p * pl.reciprocal(jnp.sum(p, axis=-1, keepdims=True), approx=True)

    # out = wei @ v  (padded lanes of v are zero -> output pad lanes are zero).
    o = jnp.einsum("bqk,bkd->bqd", p.astype(jnp.bfloat16), v,
                   preferred_element_type=jnp.float32)                # [BT, T, HP]
    o_ref[...] = o


# -------------------------------- wrapper ------------------------------------
def head_forward(x, wq, wk, wv, *, batch_tile=2):
    """x: [B, T, C] f32.  wq/wk/wv: [C, HEAD_SIZE].  Returns [B, T, HEAD_SIZE] f32."""
    B, T, C = x.shape
    H = wq.shape[1]
    assert C == N_EMBD and T <= BLOCK_SIZE and H == HEAD_SIZE
    assert B % batch_tile == 0 and T % 8 == 0

    # Fold 1/sqrt(head_size) into Wq (exact: power-of-two scale), pad each
    # projection to 128 lanes, fuse into one [C, 3*128] weight, cast to bf16.
    def pad(w):
        return jnp.pad(w, ((0, 0), (0, HP - H)))

    wqkv = jnp.concatenate([pad(wq * SCALE), pad(wk), pad(wv)], axis=1)
    w_bf = wqkv.astype(jnp.bfloat16)
    x_bf = x.astype(jnp.bfloat16)

    grid = (B // batch_tile,)        # >= 2 parallel steps -> both v7x TCs busy
    out = pl.pallas_call(
        head_kernel,
        out_shape=jax.ShapeDtypeStruct((B, T, HP), jnp.float32),
        grid=grid,
        in_specs=[
            pl.BlockSpec((batch_tile, T, C), lambda b: (b, 0, 0)),
            # Whole fused weight resident in VMEM (same block every step).
            pl.BlockSpec((C, 3 * HP), lambda b: (0, 0)),
        ],
        out_specs=pl.BlockSpec((batch_tile, T, HP), lambda b: (b, 0, 0)),
        compiler_params=pltpu.CompilerParams(
            dimension_semantics=("parallel",)),
    )(x_bf, w_bf)

    return out[:, :, :H]             # drop the zero pad lanes outside the kernel


# --------------------------- pure-JAX reference -------------------------------
def reference_head(x, wq, wk, wv):
    """PyTorch Head.forward semantics (eval mode), with matmul operands cast to
    bf16 to match the kernel's MXU input precision (f32 accumulation)."""
    bf, f32 = jnp.bfloat16, jnp.float32
    B, T, C = x.shape
    xb = x.astype(bf)
    q = jnp.dot(xb, wq.astype(bf), preferred_element_type=f32)
    k = jnp.dot(xb, wk.astype(bf), preferred_element_type=f32)
    v = jnp.dot(xb, wv.astype(bf), preferred_element_type=f32)
    wei = jnp.einsum("btd,bsd->bts", q.astype(bf), k.astype(bf),
                     preferred_element_type=f32) * (HEAD_SIZE ** -0.5)
    tril = jnp.tril(jnp.ones((T, T)))
    wei = jnp.where(tril == 0, NEG_INF, wei)
    wei = jax.nn.softmax(wei, axis=-1)
    out = jnp.einsum("bts,bsd->btd", wei.astype(bf), v.astype(bf),
                     preferred_element_type=f32)
    return out


# ----------------------------------- main -------------------------------------
if __name__ == "__main__":
    key = jax.random.PRNGKey(0)
    kx, kq, kk, kv = jax.random.split(key, 4)

    B, T = 4, 128                                  # T <= block_size
    x = jax.random.normal(kx, (B, T, N_EMBD), jnp.float32)

    # nn.Linear(n_embd, head_size, bias=False) default init ~ U(-1/sqrt(C), 1/sqrt(C))
    lim = 1.0 / (N_EMBD ** 0.5)
    wq = jax.random.uniform(kq, (N_EMBD, HEAD_SIZE), jnp.float32, -lim, lim)
    wk = jax.random.uniform(kk, (N_EMBD, HEAD_SIZE), jnp.float32, -lim, lim)
    wv = jax.random.uniform(kv, (N_EMBD, HEAD_SIZE), jnp.float32, -lim, lim)

    out = head_forward(x, wq, wk, wv, batch_tile=2)
    out = jax.block_until_ready(out)

    ref = reference_head(x, wq, wk, wv)
    np.testing.assert_allclose(np.asarray(out), np.asarray(ref),
                               rtol=5e-3, atol=5e-3)
    print("KERNEL_OK")
</pallas_src>

<mosaic_0001>
module attributes {stable_mosaic.version = 11 : i64} {
  func.func @head_kernel(%arg0: i32, %arg1: memref<2x128x384xbf16, #tpu.memory_space<vmem>>, %arg2: memref<384x384xbf16, #tpu.memory_space<vmem>>, %arg3: memref<2x128x128xf32, #tpu.memory_space<vmem>>) attributes {dimension_semantics = [#tpu.dimension_semantics<parallel>], iteration_bounds = array<i64: 2>, scalar_prefetch = 0 : i64, scratch_operands = 0 : i64, tpu.core_type = #tpu.core_type<tc>, window_params = [{transform_indices = @transform_0, window_bounds = array<i64: 2, 128, 384>}, {pipeline_mode = #tpu.pipeline_mode<synchronous>, transform_indices = @transform_1, window_bounds = array<i64: 384, 384>}, {transform_indices = @transform_2, window_bounds = array<i64: 2, 128, 128>}]} {
    %c0 = arith.constant 0 : index
    %c0_0 = arith.constant 0 : index
    %c0_1 = arith.constant 0 : index
    %0 = vector.load %arg1[%c0, %c0_0, %c0_1] : memref<2x128x384xbf16, #tpu.memory_space<vmem>>, vector<2x128x384xbf16>
    %1 = vector.shape_cast %0 : vector<2x128x384xbf16> to vector<256x384xbf16>
    %c0_2 = arith.constant 0 : index
    %c0_3 = arith.constant 0 : index
    %2 = vector.load %arg2[%c0_2, %c0_3] : memref<384x384xbf16, #tpu.memory_space<vmem>>, vector<384x384xbf16>
    %cst = arith.constant dense<0.000000e+00> : vector<256x384xf32>
    %3 = tpu.matmul %1, %2, %cst {dimension_numbers = #tpu.dot_dimension_numbers<[1], [0], [0], [1], [0, 0, 1, 1], [], []>} : vector<256x384xbf16>, vector<384x384xbf16>, vector<256x384xf32> -> vector<256x384xf32>
    %4 = vector.shape_cast %3 : vector<256x384xf32> to vector<2x128x384xf32>
    %5 = vector.extract_strided_slice %4 {offsets = [0, 0, 0], sizes = [2, 128, 128], strides = [1, 1, 1]} : vector<2x128x384xf32> to vector<2x128x128xf32>
    %6 = arith.truncf %5 : vector<2x128x128xf32> to vector<2x128x128xbf16>
    %7 = vector.extract_strided_slice %4 {offsets = [0, 0, 128], sizes = [2, 128, 128], strides = [1, 1, 1]} : vector<2x128x384xf32> to vector<2x128x128xf32>
    %8 = arith.truncf %7 : vector<2x128x128xf32> to vector<2x128x128xbf16>
    %9 = vector.extract_strided_slice %4 {offsets = [0, 0, 256], sizes = [2, 128, 128], strides = [1, 1, 1]} : vector<2x128x384xf32> to vector<2x128x128xf32>
    %10 = arith.truncf %9 : vector<2x128x128xf32> to vector<2x128x128xbf16>
    %11 = tpu.iota {dimensions = array<i32: 0>} : vector<128x128xi32>
    %12 = tpu.iota {dimensions = array<i32: 1>} : vector<128x128xi32>
    %13 = arith.cmpi sge, %11, %12 : vector<128x128xi32>
    %14 = vector.shape_cast %13 : vector<128x128xi1> to vector<1x128x128xi1>
    "tpu.trace_start"() <{level = 10 : i32, message = "bqd,bkd->bqk"}> : () -> ()
    %cst_4 = arith.constant dense<0.000000e+00> : vector<2x128x128xf32>
    %15 = tpu.matmul %6, %8, %cst_4 {dimension_numbers = #tpu.dot_dimension_numbers<[2], [2], [1], [1], [0, 0, 0, 1, 1, 1], [0], [0]>} : vector<2x128x128xbf16>, vector<2x128x128xbf16>, vector<2x128x128xf32> -> vector<2x128x128xf32>
    %cst_5 = arith.constant 0xFF800000 : f32
    "tpu.trace_stop"() : () -> ()
    %16 = vector.shape_cast %14 : vector<1x128x128xi1> to vector<1x128x128xi1>
    %17 = vector.broadcast %16 : vector<1x128x128xi1> to vector<2x128x128xi1>
    %18 = vector.broadcast %cst_5 : f32 to vector<2x128x128xf32>
    %19 = arith.select %17, %15, %18 : vector<2x128x128xi1>, vector<2x128x128xf32>
    %cst_6 = arith.constant dense<0xFF800000> : vector<2x128xf32>
    %20 = vector.multi_reduction <maximumf>, %19, %cst_6 [2] : vector<2x128x128xf32> to vector<2x128xf32>
    %21 = vector.shape_cast %20 : vector<2x128xf32> to vector<2x128x1xf32>
    %22 = vector.broadcast %21 : vector<2x128x1xf32> to vector<2x128x128xf32>
    %23 = arith.subf %19, %22 : vector<2x128x128xf32>
    %24 = math.exp %23 : vector<2x128x128xf32>
    %cst_7 = arith.constant dense<0.000000e+00> : vector<2x128xf32>
    %25 = vector.multi_reduction <add>, %24, %cst_7 [2] : vector<2x128x128xf32> to vector<2x128xf32>
    %26 = vector.shape_cast %25 : vector<2x128xf32> to vector<2x128x1xf32>
    %27 = tpu.reciprocal %26 {approx = true} : vector<2x128x1xf32> -> vector<2x128x1xf32>
    %28 = vector.broadcast %27 : vector<2x128x1xf32> to vector<2x128x128xf32>
    %29 = arith.mulf %24, %28 : vector<2x128x128xf32>
    %30 = arith.truncf %29 : vector<2x128x128xf32> to vector<2x128x128xbf16>
    "tpu.trace_start"() <{level = 10 : i32, message = "bqk,bkd->bqd"}> : () -> ()
    %cst_8 = arith.constant dense<0.000000e+00> : vector<2x128x128xf32>
    %31 = tpu.matmul %30, %10, %cst_8 {dimension_numbers = #tpu.dot_dimension_numbers<[2], [1], [1], [2], [0, 0, 0, 1, 1, 2], [0], [0]>} : vector<2x128x128xbf16>, vector<2x128x128xbf16>, vector<2x128x128xf32> -> vector<2x128x128xf32>
    "tpu.trace_stop"() : () -> ()
    %c0_9 = arith.constant 0 : index
    %c0_10 = arith.constant 0 : index
    %c0_11 = arith.constant 0 : index
    %32 = vector.load %arg3[%c0_9, %c0_10, %c0_11] : memref<2x128x128xf32, #tpu.memory_space<vmem>>, vector<2x128x128xf32>
    tpu.vector_store %arg3[%c0_9, %c0_10, %c0_11], %31 {strides = array<i32>} : memref<2x128x128xf32, #tpu.memory_space<vmem>>, vector<2x128x128xf32>,
    return
  }
  func.func @transform_0(%arg0: i32) -> (i32, i32, i32) {
    %c0_i32 = arith.constant 0 : i32
    %c0_i32_0 = arith.constant 0 : i32
    %c0_i32_1 = arith.constant 0 : i32
    return %arg0, %c0_i32, %c0_i32_0 : i32, i32, i32
  }
  func.func @transform_1(%arg0: i32) -> (i32, i32) {
    %c0_i32 = arith.constant 0 : i32
    %c0_i32_0 = arith.constant 0 : i32
    %c0_i32_1 = arith.constant 0 : i32
    return %c0_i32, %c0_i32_0 : i32, i32
  }
  func.func @transform_2(%arg0: i32) -> (i32, i32, i32) {
    %c0_i32 = arith.constant 0 : i32
    %c0_i32_0 = arith.constant 0 : i32
    %c0_i32_1 = arith.constant 0 : i32
    return %arg0, %c0_i32, %c0_i32_0 : i32, i32, i32
  }
}

</mosaic_0001>

<bundles_post_ra>
// kernel: tpu_custom_call.1
= control target key start
LH: loop header
LB: loop body
LE: loop exit
PB: predicated region body
PF: predicated region fallthrough
CT: control target
= control target key end

     0   :  { %7 = vsyncpa [#allocation3], 0  ;;  %s4656_s0 = inlined_call_operand.hbm [shape: bf16[4,128,384], index: 0, kind: input, shape index: {}]   ;;  %s4657_s1 = inlined_call_operand.hbm [shape: bf16[384,384], index: 1, kind: input, shape index: {}]   ;;  %s4658_s2 = inlined_call_operand.hbm [shape: f32[4,128,128], index: 2, kind: output, shape index: {}]  }
   0x1   :  { %9 = vsyncpa [#allocation3 + $0x1], 0 }
   0x2   :  { %10 = vsyncpa [#allocation6], 0 }
   0x3   :  { %11 = vsyncpa [#allocation4], 0 }
   0x4   :  { %13 = vsyncpa [#allocation4 + $0x1], 0  ;;  %s3742_s9 = smov 0   ;;  %s3744_s10 = smov 0  }
   0x5   :  { %s3746_s11 = smov 0   ;;  %s3748_s12 = smov 0  }
   0x6 LB: > { %s3763_s13 = sadd.s32 4294967295, %s3717_s12   ;;  %s2658_s14 = sadd.s32 4294967294, %s3717_s12   ;;  %s3717_s12 = sphi %s3748_s12, %s4678_s12   ;;  %s3713_s11 = sphi %s3746_s11, %s4677_s11   ;;  %s3709_s10 = sphi %s3744_s10, %s4676_s10   ;;  %s3705_s9 = sphi %s3742_s9, %s4675_s9  }
   0x7   : > { %p39_p0 = scmp.ne.s32.totalorder %s3709_s10, %s3705_s9  ;;  %p4659_p1 = scmp.eq.s32.totalorder %s3763_s13, 0 }
   0x8   : > { %p90_p3 = scmp.eq.s32.totalorder %s2658_s14, 1  ;;  %p2659_p5 = scmp.ge.s32.totalorder %s3717_s12, 1 }
   0x9   : > { %p3772_p4 = por %p4659_p1, %p39_p0  ;;  %p97_p7 = scmp.lt.s32.totalorder %s3717_s12, 3 }
   0xa   : > { %p3777_p6 = por %p90_p3, %p39_p0  ;;  %s3719_s18 = smov [#allocation5]  }
   0xb   : > { %s4662_s15 = scalar_select %p3772_p4, 1, 0 }
   0xc   : > { %s4663_s16 = scalar_select %p3777_p6, 1, 0 }
   0xd   : > { %p3782_p8 = pnand %p2659_p5, %p97_p7  ;;  %s109_s19 = sshll.u32 %s3719_s18, 4  ;;  %s3786_s19 = int_to_ptr.vmem [resolvable:$true] %s109_s19 }
   0xe   : > { %s3798_s21 = sadd.s32 1, %s3717_s12   ;;  %s26_s22 = sadd.s32 1, %s3713_s11 }
   0xf   : > { %s4664_s17 = scalar_select %p3782_p8, 1, 0 }
  0x10   : > { %p3247_p9 = pneg %p3782_p8  ;;  %s23_s23 = ssub.s32 %s3717_s12, %s3798_s21 }
  0x11   : > { %s3589_s26 = scalar_lea.hbm %s4657_s1, 9216 }
  0x12   : > { %p3793_p11 = pnand %p3247_p9, %p4659_p1  ;;  %p3590_p12 = scmp.ne.s32.totalorder %s4657_s1, %s3589_s26 }
  0x13   : > { %p3596_p5 = scmp.lt.u32.totalorder %s3589_s26, %s4657_s1 }
  0x14   : > { %p3591_p13 = pneg %p3793_p11 }
  0x16   : > { %p3592_p0 = pnand %p3591_p13, %p3590_p12 }
  0x18   : > { %p3593_p3 = pneg %p3592_p0 }
  0x1a   : > { %p3598_p7 = pnand %p3596_p5, %p3593_p3 }
  0x1c   : > { %3601 = shalt.err (!%p3598_p7)
}
  0x1d   : > { %s3602_s3 = scalar_lea.vmem %s3786_s19, 9216  ;;  %p3610_p2 = scmp.lt.s32.totalorder %s3786_s19, %s3786_s19 }
  0x1e   : > { %p3603_p9 = scmp.ne.s32.totalorder %s3786_s19, %s3602_s3  ;;  %p3611_p6 = scmp.lt.s32.totalorder %s3602_s3, %s3602_s3 }
  0x20   : > { %p3605_p10 = pnand %p3603_p9, %p3591_p13  ;;  %p3612_p4 = por %p3611_p6, %p3610_p2 }
  0x22   : > { %p3606_p1 = pneg %p3605_p10 }
  0x24   : > { %p3613_p8 = pnand %p3612_p4, %p3606_p1 }
  0x26   : > { %3616 = shalt.err (!%p3613_p8)
}
  0x27   : > { %s3720_s4 = smov 192   ;;  %s3721_s5 = smov 12  }
  0x28   : > { %3250 = dma.hbm_to_vmem [thread:$0]  (!%p3793_p11), %s4657_s1, 9216, %s3786_s19, [#allocation6], %s3720_s4, %s3720_s4, %s3721_s5  }
  0x29   : > { %p24_p1 = scmp.eq.s32.totalorder %s23_s23, 0  ;;  %p33_p2 = scmp.ne.s32.totalorder %s3713_s11, %s3709_s10 }
  0x2a   : > { %p34_p4 = scmp.eq.s32.totalorder %s3717_s12, 0  ;;  %p3260_p6 = scmp.lt.s32.totalorder %s3717_s12, 2 }
  0x2b   : > { %s3832_s8 = scalar_select %p24_p1, %s3713_s11, %s26_s22  }
  0x2c   : > { %p35_p8 = por %p34_p4, %p33_p2  ;;  %p4666_p10 = scmp.eq.s32.totalorder %s3763_s13, 1 }
  0x2d   : > { %s123_s18 = sand.u32 1, %s3713_s11   ;;  %s3237_s20 = smul.u32 6144, %s3717_s12 }
  0x2e   : > { %p3836_p12 = por %p4666_p10, %p33_p2  ;;  %s3236_s24 = smul.u32 384, %s123_s18 }
  0x2f   : > { %p3842_p13 = pnand %p3260_p6, %p35_p8  ;;  %s3849_s22 = scalar_lea.hbm %s4656_s0, %s3237_s20 }
  0x30   : > { %s127_s26 = scalar_lea.vmem [#allocation2], %s3236_s24  ;;  %s3853_s28 = scalar_lea.sflag [#allocation3], %s123_s18 }
  0x31   : > { %s135_s27 = sshll.u32 %s127_s26, 4  ;;  %s3617_s29 = scalar_lea.hbm %s3849_s22, 6144  ;;  %s3851_s27 = int_to_ptr.vmem [resolvable:$true] %s135_s27 }
  0x32   : > { %p3618_p11 = scmp.ne.s32.totalorder %s3849_s22, %s3617_s29  ;;  %p3619_p0 = pneg %p3842_p13 }
  0x33   : > { %s3622_s6 = scalar_lea.hbm %s4656_s0, 12288  ;;  %p3623_p7 = scmp.lt.u32.totalorder %s3849_s22, %s4656_s0 }
  0x34   : > { %p3620_p3 = pnand %p3619_p0, %p3618_p11  ;;  %p3624_p9 = scmp.lt.u32.totalorder %s3622_s6, %s3617_s29 }
  0x35   : > { %p3626_p2 = scmp.lt.u32.totalorder %s3617_s29, %s3849_s22 }
  0x36   : > { %p3621_p5 = pneg %p3620_p3  ;;  %p3625_p1 = por %p3624_p9, %p3623_p7 }
  0x38   : > { %p3627_p4 = por %p3626_p2, %p3625_p1 }
  0x3a   : > { %p3628_p6 = pnand %p3627_p4, %p3621_p5 }
  0x3c   : > { %3631 = shalt.err (!%p3628_p6)
}
  0x3d   : > { %s3632_s18 = scalar_lea.vmem %s3851_s27, 6144  ;;  %s3722_s24 = smov [#allocation2]  }
  0x3e   : > { %p3633_p8 = scmp.ne.s32.totalorder %s3851_s27, %s3632_s18  ;;  %s3637_s19 = sshll.u32 %s3722_s24, 4  ;;  %s3638_s19 = int_to_ptr.vmem [resolvable:$false] %s3637_s19 }
  0x3f   : > { %s3639_s23 = scalar_lea.vmem %s3638_s19, 12288  ;;  %p3640_p3 = scmp.lt.s32.totalorder %s3851_s27, %s3638_s19 }
  0x40   : > { %p3635_p10 = pnand %p3633_p8, %p3619_p0  ;;  %p3641_p7 = scmp.lt.s32.totalorder %s3639_s23, %s3632_s18 }
  0x42   : > { %p3636_p11 = pneg %p3635_p10  ;;  %p3642_p9 = por %p3641_p7, %p3640_p3 }
  0x44   : > { %p3643_p1 = pnand %p3642_p9, %p3636_p11 }
  0x46   : > { %3646 = shalt.err (!%p3643_p1)
}
  0x47   : > { %3254 = dma.hbm_to_vmem [thread:$0]  (!%p3842_p13), %s3849_s22, 6144, %s3851_s27, %s3853_s28, %s3720_s4, %s3720_s4, %s3721_s5  }
  0x48   : > { %p4669_p0 = scmp.ne.s32.totalorder %s4664_s17, 0 }
  0x49   : > { %s3887_s26 = sand.u32 (!%p4669_p0), 1, %s3709_s10   ;;  %p4670_p5 = scmp.ne.s32.totalorder (!%p4669_p0), %s4662_s15, 0 }
  0x4a   : > { %147 = sbr.rel (%p4669_p0) target bundleno = 1417 (0x589), region = 28  ;;  %s150_s30 = scalar_lea.sflag (!%p4669_p0), [#allocation3], %s3887_s26 }
  0x4b   : > { %s3238_s29 = smul.u32 (!%p4669_p0), 384, %s3887_s26 }
  0x4d   : > { %s3891_s3 = scalar_lea.vmem (!%p4669_p0), [#allocation2], %s3238_s29 }
  0x51   : > { %3692 = dma.done.wait (%p4670_p5), %s150_s30, 6144  }
  0x52   : > { %3694 = vsyncadd (%p4670_p5), %s150_s30, 4294961152  ;;  %p4671_p13 = scmp.eq.s32.totalorder %s3763_s13, 0 }
  0x54   : > { %3696 = dma.done.wait (%p4671_p13), [#allocation6], 9216   ;;  %p4672_p2 = pmov %p4671_p13 }
  0x55   : > { %v3301_v0 = vld [vmem:[#allocation5 + $0x4] ss:$12 sps:$4 sm:$0xff]   ;;  %v3303_v1 = vld [vmem:[#allocation5] ss:$12 sps:$4 sm:$0xff]   ;;  %v3304_v2 = vld [vmem:[#allocation5 + $0x1c] ss:$12 sps:$4 sm:$0xff]  }
  0x56   : > { %3698 = vsyncadd (%p4672_p2), [#allocation6], 4294958080  ;;  %981 = vmatprep.subr.bf16.mxu0 %v3301_v0  ;;  %v3306_v3 = vld [vmem:[#allocation5 + $0x18] ss:$12 sps:$4 sm:$0xff]   ;;  %v3307_v4 = vld [vmem:[#allocation5 + $0x34] ss:$12 sps:$4 sm:$0xff]  }
  0x57   : > { %982 = vmatpush1.bf16.msra.mxu0 %v3303_v1  ;;  %v3309_v5 = vld [vmem:[#allocation5 + $0x30] ss:$12 sps:$4 sm:$0xff]   ;;  %v3310_v6 = vld [vmem:[#allocation5 + $0x4c] ss:$12 sps:$4 sm:$0xff]   ;;  %v3312_v7 = vld [vmem:[#allocation5 + $0x48] ss:$12 sps:$4 sm:$0xff]  }
  0x58   : > { %983 = vmatprep.subr.bf16.mxu0 %v3304_v2  ;;  %v3313_v8 = vld [vmem:[#allocation5 + $0x64] ss:$12 sps:$4 sm:$0xff]   ;;  %v3315_v9 = vld [vmem:[#allocation5 + $0x60] ss:$12 sps:$4 sm:$0xff]   ;;  %v3316_v10 = vld [vmem:[#allocation5 + $0x7c] ss:$12 sps:$4 sm:$0xff]  }
  0x59   : > { %v3318_v11 = vld [vmem:[#allocation5 + $0x78] ss:$12 sps:$4 sm:$0xff]   ;;  %v3319_v12 = vld [vmem:[#allocation5 + $0x94] ss:$12 sps:$4 sm:$0xff]   ;;  %v3321_v14 = vld [vmem:[#allocation5 + $0x90] ss:$12 sps:$4 sm:$0xff]  }
  0x5a   : > { %v3351_v13 = vld [vmem:[%s3891_s3 + $0x4] ss:$12 sps:$4 sm:$0xff]   ;;  %v3322_v15 = vld [vmem:[#allocation5 + $0xac] ss:$12 sps:$4 sm:$0xff]   ;;  %v3324_v16 = vld [vmem:[#allocation5 + $0xa8] ss:$12 sps:$4 sm:$0xff]  }
  0x5b   : > { %984 = vmatpush1.bf16.msra.mxu0 %v3306_v3  ;;  %1013 = vmatprep.mubr.bf16.mxu0 %v3351_v13  ;;  %v3325_v17 = vld [vmem:[#allocation5 + $0xc4] ss:$12 sps:$4 sm:$0xff]   ;;  %v3327_v18 = vld [vmem:[#allocation5 + $0xc0] ss:$12 sps:$4 sm:$0xff]   ;;  %v3328_v19 = vld [vmem:[#allocation5 + $0xdc] ss:$12 sps:$4 sm:$0xff]  }
  0x5c   : > { %985 = vmatprep.subr.bf16.mxu0 %v3307_v4  ;;  %1399 = vmatprep.mubr.bf16.mxu1 %v3351_v13  ;;  %v3330_v20 = vld [vmem:[#allocation5 + $0xd8] ss:$12 sps:$4 sm:$0xff]   ;;  %v3331_v21 = vld [vmem:[#allocation5 + $0xf4] ss:$12 sps:$4 sm:$0xff]   ;;  %v3333_v22 = vld [vmem:[#allocation5 + $0xf0] ss:$12 sps:$4 sm:$0xff]  }
  0x5d   : > { %v3334_v23 = vld [vmem:[#allocation5 + $0x10c] ss:$12 sps:$4 sm:$0xff]   ;;  %v3385_v24 = vld [vmem:[#allocation5 + $0xc8] ss:$12 sps:$4 sm:$0xff]   ;;  %v3337_v29 = vld [vmem:[#allocation5 + $0x124] ss:$12 sps:$4 sm:$0xff]  }
  0x5e   : > { %v3386_v25 = vld [vmem:[#allocation5 + $0x8] ss:$12 sps:$4 sm:$0xff]   ;;  %2796 = vmatprep.subr.bf16.mxu1 %v3385_v24  ;;  %v3387_v26 = vld [vmem:[#allocation5 + $0xe0] ss:$12 sps:$4 sm:$0xff]   ;;  %v3395_v30 = vld [vmem:[#allocation5 + $0xf8] ss:$12 sps:$4 sm:$0xff]  }
  0x5f   : > { %986 = vmatpush1.bf16.msra.mxu0 %v3309_v5  ;;  %2797 = vmatpush3.bf16.msra.mxu1 %v3386_v25  ;;  %v3388_v27 = vld [vmem:[#allocation5 + $0x20] ss:$12 sps:$4 sm:$0xff]   ;;  %v3336_v28 = vld [vmem:[#allocation5 + $0x108] ss:$12 sps:$4 sm:$0xff]   ;;  %v3396_v31 = vld [vmem:[#allocation5 + $0x38] ss:$12 sps:$4 sm:$0xff]  }
  0x60   : > { %987 = vmatprep.subr.bf16.mxu0 %v3310_v6  ;;  %2798 = vmatprep.subr.bf16.mxu1 %v3387_v26  ;;  %v3397_v32 = vld [vmem:[#allocation5 + $0x110] ss:$12 sps:$4 sm:$0xff]   ;;  %v3339_v33 = vld [vmem:[#allocation5 + $0x120] ss:$12 sps:$4 sm:$0xff]   ;;  %v3402_v36 = vld [vmem:[#allocation5 + $0x128] ss:$12 sps:$4 sm:$0xff]  }
  0x61   : > { %v3340_v34 = vld [vmem:[#allocation5 + $0x13c] ss:$12 sps:$4 sm:$0xff]   ;;  %v3342_v37 = vld [vmem:[#allocation5 + $0x138] ss:$12 sps:$4 sm:$0xff]   ;;  %v3343_v38 = vld [vmem:[#allocation5 + $0x154] ss:$12 sps:$4 sm:$0xff]  }
  0x62   : > { %v3398_v35 = vld [vmem:[#allocation5 + $0x50] ss:$12 sps:$4 sm:$0xff]   ;;  %v3403_v39 = vld [vmem:[#allocation5 + $0x68] ss:$12 sps:$4 sm:$0xff]   ;;  %v3404_v40 = vld [vmem:[#allocation5 + $0x140] ss:$12 sps:$4 sm:$0xff]  }
  0x63   : > { %988 = vmatpush1.bf16.msra.mxu0 %v3312_v7  ;;  %2799 = vmatpush3.bf16.msra.mxu1 %v3388_v27  ;;  %v3345_v41 = vld [vmem:[#allocation5 + $0x150] ss:$12 sps:$4 sm:$0xff]   ;;  %v3346_v42 = vld [vmem:[#allocation5 + $0x16c] ss:$12 sps:$4 sm:$0xff]   ;;  %v3348_v45 = vld [vmem:[#allocation5 + $0x168] ss:$12 sps:$4 sm:$0xff]  }
  0x64   : > { %989 = vmatprep.subr.bf16.mxu0 %v3313_v8  ;;  %2800 = vmatprep.subr.bf16.mxu1 %v3395_v30  ;;  %v3405_v43 = vld [vmem:[#allocation5 + $0x80] ss:$12 sps:$4 sm:$0xff]   ;;  %v3412_v44 = vld [vmem:[#allocation5 + $0x158] ss:$12 sps:$4 sm:$0xff]   ;;  %v3414_v49 = vld [vmem:[#allocation5 + $0x170] ss:$12 sps:$4 sm:$0xff]  }
  0x65   : > { %v3354_v46 = vld [vmem:[#allocation5 + $0x184] ss:$12 sps:$4 sm:$0xff]   ;;  %v3349_v48 = vld [vmem:[%s3891_s3] ss:$12 sps:$4 sm:$0xff]   ;;  %v3355_v51 = vld [vmem:[%s3891_s3 + $0x1c] ss:$12 sps:$4 sm:$0xff]  }
  0x66   : > { %v3413_v47 = vld [vmem:[#allocation5 + $0x98] ss:$12 sps:$4 sm:$0xff]   ;;  %v3352_v50 = vld [vmem:[#allocation5 + $0x180] ss:$12 sps:$4 sm:$0xff]   ;;  %v3363_v52 = vld [vmem:[#allocation5 + $0x19c] ss:$12 sps:$4 sm:$0xff]  }
  0x67   : > { %990 = vmatpush1.bf16.msra.mxu0 %v3315_v9  ;;  %2801 = vmatpush3.bf16.msra.mxu1 %v3396_v31  ;;  %v3415_v53 = vld [vmem:[#allocation5 + $0xb0] ss:$12 sps:$4 sm:$0xff]   ;;  %v3361_v54 = vld [vmem:[#allocation5 + $0x198] ss:$12 sps:$4 sm:$0xff]   ;;  %v3372_v56 = vld [vmem:[#allocation5 + $0x1b4] ss:$12 sps:$4 sm:$0xff]  }
  0x68   : > { %991 = vmatprep.subr.bf16.mxu0 %v3316_v10  ;;  %2802 = vmatprep.subr.bf16.mxu1 %v3397_v32  ;;  %v3357_v55 = vld [vmem:[%s3891_s3 + $0x18] ss:$12 sps:$4 sm:$0xff]   ;;  %v3358_v57 = vld [vmem:[%s3891_s3 + $0x34] ss:$12 sps:$4 sm:$0xff]   ;;  %v3370_v58 = vld [vmem:[#allocation5 + $0x1b0] ss:$12 sps:$4 sm:$0xff]  }
  0x69   : > { %v3381_v59 = vld [vmem:[#allocation5 + $0x1cc] ss:$12 sps:$4 sm:$0xff]   ;;  %v3379_v60 = vld [vmem:[#allocation5 + $0x1c8] ss:$12 sps:$4 sm:$0xff]   ;;  %v3394_v61 = vld [vmem:[#allocation5 + $0x1e4] ss:$12 sps:$4 sm:$0xff]  }
  0x6a   : > { %v3360_v62 = vld [vmem:[%s3891_s3 + $0x30] ss:$12 sps:$4 sm:$0xff]   ;;  %v3364_v63 = vld [vmem:[%s3891_s3 + $0x4c] ss:$12 sps:$4 sm:$0xff]   ;;  %v3424_v3 = vld [vmem:[#allocation5 + $0x214] ss:$12 sps:$4 sm:$0xff]  }
  0x6b   : > { %992 = vmatpush1.bf16.msra.mxu0 %v3318_v11  ;;  %2803 = vmatpush3.bf16.msra.mxu1 %v3398_v35  ;;  %v3392_v0 = vld [vmem:[#allocation5 + $0x1e0] ss:$12 sps:$4 sm:$0xff]   ;;  %v3411_v1 = vld [vmem:[#allocation5 + $0x1fc] ss:$12 sps:$4 sm:$0xff]   ;;  %v3409_v2 = vld [vmem:[#allocation5 + $0x1f8] ss:$12 sps:$4 sm:$0xff]  }
  0x6c   : > { %993 = vmatprep.subr.bf16.mxu0 %v3319_v12  ;;  %2804 = vmatprep.subr.bf16.mxu1 %v3402_v36  ;;  %v3366_v4 = vld [vmem:[%s3891_s3 + $0x48] ss:$12 sps:$4 sm:$0xff]   ;;  %v3367_v5 = vld [vmem:[%s3891_s3 + $0x64] ss:$12 sps:$4 sm:$0xff]   ;;  %v3433_v7 = vld [vmem:[#allocation5 + $0x22c] ss:$12 sps:$4 sm:$0xff]  }
  0x6d   : > { %v3422_v6 = vld [vmem:[#allocation5 + $0x210] ss:$12 sps:$4 sm:$0xff]   ;;  %v3431_v8 = vld [vmem:[#allocation5 + $0x228] ss:$12 sps:$4 sm:$0xff]   ;;  %v3369_v9 = vld [vmem:[%s3891_s3 + $0x60] ss:$12 sps:$4 sm:$0xff]  }
  0x6e   : > { %v3373_v10 = vld [vmem:[%s3891_s3 + $0x7c] ss:$12 sps:$4 sm:$0xff]   ;;  %v3375_v11 = vld [vmem:[%s3891_s3 + $0x78] ss:$12 sps:$4 sm:$0xff]   ;;  %v3376_v12 = vld [vmem:[%s3891_s3 + $0x94] ss:$12 sps:$4 sm:$0xff]  }
  0x6f   : > { %994 = vmatpush1.bf16.msra.mxu0 %v3321_v14  ;;  %2805 = vmatpush3.bf16.msra.mxu1 %v3403_v39  ;;  %v3378_v13 = vld [vmem:[%s3891_s3 + $0x90] ss:$12 sps:$4 sm:$0xff]   ;;  %v3382_v14 = vld [vmem:[%s3891_s3 + $0xac] ss:$12 sps:$4 sm:$0xff]   ;;  %v3406_v24 = vld [vmem:[%s3891_s3 + $0xf4] ss:$12 sps:$4 sm:$0xff]  }
  0x70   : > { %995 = vmatprep.subr.bf16.mxu0 %v3322_v15  ;;  %2806 = vmatprep.subr.bf16.mxu1 %v3404_v40  ;;  %v3384_v15 = vld [vmem:[%s3891_s3 + $0xa8] ss:$12 sps:$4 sm:$0xff]   ;;  %v3452_v26 = vld [vmem:[#allocation5 + $0x200] ss:$12 sps:$4 sm:$0xff]   ;;  %v3408_v27 = vld [vmem:[%s3891_s3 + $0xf0] ss:$12 sps:$4 sm:$0xff]  }
  0x71   : > { %v3451_v25 = vld [vmem:[#allocation5 + $0x1e8] ss:$12 sps:$4 sm:$0xff]   ;;  %v3455_v30 = vld [vmem:[#allocation5 + $0x230] ss:$12 sps:$4 sm:$0xff]   ;;  %v3427_v35 = vld [vmem:[%s3891_s3 + $0x138] ss:$12 sps:$4 sm:$0xff]  }
  0x72   : > { %v3418_v31 = vld [vmem:[%s3891_s3 + $0x108] ss:$12 sps:$4 sm:$0xff]   ;;  %v3419_v32 = vld [vmem:[%s3891_s3 + $0x124] ss:$12 sps:$4 sm:$0xff]   ;;  %v3723_v40 = vmov 0   ;;  %s2667_s15 = sshll.u32 %s3887_s26, 8 }
  0x73   : > { %996 = vmatpush1.bf16.msra.mxu0 %v3324_v16  ;;  %2807 = vmatpush3.bf16.msra.mxu1 %v3405_v43  ;;  %v3389_v16 = vld [vmem:[%s3891_s3 + $0xc4] ss:$12 sps:$4 sm:$0xff]   ;;  %v3428_v36 = vld [vmem:[%s3891_s3 + $0x154] ss:$12 sps:$4 sm:$0xff]   ;;  %s4571_s17 = scalar_lea.vmem [#allocation7], %s2667_s15  ;;  %s2795_s4 = sshll.u32 %s3763_s13, 12 }
  0x74   : > { %997 = vmatprep.subr.bf16.mxu0 %v3325_v17  ;;  %2808 = vmatprep.subr.bf16.mxu1 %v3412_v44  ;;  %v3445_v17 = vld [vmem:[#allocation5 + $0x188] ss:$12 sps:$4 sm:$0xff]   ;;  %v3439_v43 = vld [vmem:[%s3891_s3 + $0x38] ss:$12 sps:$4 sm:$0xff]   ;;  %v3440_v44 = vld [vmem:[%s3891_s3 + $0x50] ss:$12 sps:$4 sm:$0xff]   ;;  %s4607_s27 = scalar_lea.hbm %s4658_s2, %s2795_s4 }
  0x75   : > { %v3436_v39 = vld [vmem:[%s3891_s3 + $0x168] ss:$12 sps:$4 sm:$0xff]   ;;  %s2575_s5 = sshll.u32 %s4571_s17, 4  ;;  %s2561_s13 = scalar_lea.sflag [#allocation4], %s3887_s26  ;;  %s4609_s5 = int_to_ptr.vmem [resolvable:$true] %s2575_s5 }
  0x76   : > { %s3647_s28 = scalar_lea.vmem %s4609_s5, 4096  ;;  %s3724_s6 = smov [#allocation7]  }
  0x77   : > { %998 = vmatpush1.bf16.msra.mxu0 %v3327_v18  ;;  %2809 = vmatpush3.bf16.msra.mxu1 %v3413_v47  ;;  %v3446_v18 = vld [vmem:[#allocation5 + $0x1a0] ss:$12 sps:$4 sm:$0xff]   ;;  %v3443_v47 = vld [vmem:[%s3891_s3 + $0x98] ss:$12 sps:$4 sm:$0xff]   ;;  %p3648_p4 = scmp.ne.s32.totalorder %s4609_s5, %s3647_s28  ;;  %s3651_s7 = sshll.u32 %s3724_s6, 4  ;;  %s3652_s7 = int_to_ptr.vmem [resolvable:$false] %s3651_s7 }
  0x78   : > { %999 = vmatprep.subr.bf16.mxu0 %v3328_v19  ;;  %2810 = vmatprep.subr.bf16.mxu1 %v3414_v49  ;;  %v3391_v19 = vld [vmem:[%s3891_s3 + $0xc0] ss:$12 sps:$4 sm:$0xff]   ;;  %v3447_v49 = vld [vmem:[%s3891_s3 + $0xc8] ss:$12 sps:$4 sm:$0xff]   ;;  %s3653_s20 = scalar_lea.vmem %s3652_s7, 8192  ;;  %p3654_p10 = scmp.lt.s32.totalorder %s4609_s5, %s3652_s7 }
  0x79   : > { %p3649_p6 = pnand %p3648_p4, %p3836_p12  ;;  %p3655_p11 = scmp.lt.s32.totalorder %s3653_s20, %s3647_s28 }
  0x7b   : > { %1000 = vmatpush1.bf16.msra.mxu0 %v3330_v20  ;;  %2811 = vmatpush3.bf16.msra.mxu1 %v3415_v53  ;;  %v3399_v20 = vld [vmem:[%s3891_s3 + $0xdc] ss:$12 sps:$4 sm:$0xff]   ;;  %p3650_p8 = pneg %p3649_p6  ;;  %p3656_p3 = por %p3655_p11, %p3654_p10 }
  0x7c   : > { %1001 = vmatprep.subr.bf16.mxu0 %v3331_v21  ;;  %2996 = vmatprep.subr.bf16.mxu1 %v3445_v17  ;;  %v3448_v21 = vld [vmem:[#allocation5 + $0x1b8] ss:$12 sps:$4 sm:$0xff]   ;;  %v3457_v53 = vld [vmem:[%s3891_s3 + $0x128] ss:$12 sps:$4 sm:$0xff]  }
  0x7d   : > { %p3657_p7 = pnand %p3656_p3, %p3650_p8 }
  0x7e   : > { %1400 = vmatmul.mubr.bf16.vlgmr.msra.gmra.mrb[0].mxu1 %v3349_v48 }
  0x7f   : > { %1002 = vmatpush1.bf16.msra.mxu0 %v3333_v22  ;;  %1407 = vmatprep.mubr.bf16.mxu1 %v3355_v51  ;;  %v3449_v22 = vld [vmem:[#allocation5 + $0x1d0] ss:$12 sps:$4 sm:$0xff]  }
  0x80   : > { %1003 = vmatprep.subr.bf16.mxu0 %v3334_v23  ;;  %2997 = vmatpush3.bf16.msra.mxu1 %v3445_v17  ;;  %v3401_v23 = vld [vmem:[%s3891_s3 + $0xd8] ss:$12 sps:$4 sm:$0xff]  }
  0x81   : > { %2998 = vmatprep.subr.bf16.mxu1 %v3446_v18 }
  0x83   : > { %1004 = vmatpush1.bf16.msra.mxu0 %v3336_v28  ;;  %v3416_v28 = vld [vmem:[%s3891_s3 + $0x10c] ss:$12 sps:$4 sm:$0xff]  }
  0x84   : > { %1005 = vmatprep.subr.bf16.mxu0 %v3337_v29  ;;  %2999 = vmatpush3.bf16.msra.mxu1 %v3446_v18  ;;  %v3454_v29 = vld [vmem:[#allocation5 + $0x218] ss:$12 sps:$4 sm:$0xff]  }
  0x85   : > { %3000 = vmatprep.subr.bf16.mxu1 %v3448_v21 }
  0x86   : > { %1408 = vmatmul.mubr.bf16.gmra.mrb[4].mxu1 %v3357_v55 }
  0x87   : > { %1006 = vmatpush1.bf16.msra.mxu0 %v3339_v33  ;;  %1415 = vmatprep.mubr.bf16.mxu1 %v3358_v57  ;;  %v3421_v33 = vld [vmem:[%s3891_s3 + $0x120] ss:$12 sps:$4 sm:$0xff]  }
  0x88   : > { %1007 = vmatprep.subr.bf16.mxu0 %v3340_v34  ;;  %3001 = vmatpush3.bf16.msra.mxu1 %v3448_v21  ;;  %v3425_v34 = vld [vmem:[%s3891_s3 + $0x13c] ss:$12 sps:$4 sm:$0xff]  }
  0x89   : > { %3002 = vmatprep.subr.bf16.mxu1 %v3449_v22 }
  0x8b   : > { %1008 = vmatpush1.bf16.msra.mxu0 %v3342_v37  ;;  %v3430_v37 = vld [vmem:[%s3891_s3 + $0x150] ss:$12 sps:$4 sm:$0xff]  }
  0x8c   : > { %1009 = vmatprep.subr.bf16.mxu0 %v3343_v38  ;;  %3003 = vmatpush3.bf16.msra.mxu1 %v3449_v22  ;;  %v3434_v38 = vld [vmem:[%s3891_s3 + $0x16c] ss:$12 sps:$4 sm:$0xff]  }
  0x8d   : > { %3004 = vmatprep.subr.bf16.mxu1 %v3451_v25 }
  0x8e   : > { %1416 = vmatmul.mubr.bf16.gmra.mrb[8].mxu1 %v3360_v62 }
  0x8f   : > { %1010 = vmatpush1.bf16.msra.mxu0 %v3345_v41  ;;  %1423 = vmatprep.mubr.bf16.mxu1 %v3364_v63  ;;  %v3437_v41 = vld [vmem:[%s3891_s3 + $0x8] ss:$12 sps:$4 sm:$0xff]  }
  0x90   : > { %1011 = vmatprep.subr.bf16.mxu0 %v3346_v42  ;;  %3005 = vmatpush3.bf16.msra.mxu1 %v3451_v25  ;;  %v3438_v42 = vld [vmem:[%s3891_s3 + $0x20] ss:$12 sps:$4 sm:$0xff]  }
  0x91   : > { %3006 = vmatprep.subr.bf16.mxu1 %v3452_v26 }
  0x93   : > { %1012 = vmatpush1.bf16.msra.mxu0 %v3348_v45  ;;  %v3441_v45 = vld [vmem:[%s3891_s3 + $0x68] ss:$12 sps:$4 sm:$0xff]  }
  0x94   : > { %1174 = vmatprep.subr.bf16.mxu0 %v3354_v46  ;;  %3007 = vmatpush3.bf16.msra.mxu1 %v3452_v26  ;;  %v3442_v46 = vld [vmem:[%s3891_s3 + $0x80] ss:$12 sps:$4 sm:$0xff]  }
  0x95   : > { %3008 = vmatprep.subr.bf16.mxu1 %v3454_v29 }
  0x96   : > { %1014 = vmatmul.mubr.bf16.vlgmr.msra.gmra.mrb[0].mxu0 %v3349_v48  ;;  %1424 = vmatmul.mubr.bf16.gmra.mrb[12].mxu1 %v3366_v4  ;;  %v3444_v48 = vld [vmem:[%s3891_s3 + $0xb0] ss:$12 sps:$4 sm:$0xff]  }
  0x97   : > { %1175 = vmatpush1.bf16.msra.mxu0 %v3352_v50  ;;  %1023 = vmatprep.mubr.bf16.mxu0 %v3355_v51  ;;  %v3450_v50 = vld [vmem:[%s3891_s3 + $0xe0] ss:$12 sps:$4 sm:$0xff]   ;;  %v3453_v51 = vld [vmem:[%s3891_s3 + $0xf8] ss:$12 sps:$4 sm:$0xff]  }
  0x98   : > { %1176 = vmatprep.subr.bf16.mxu0 %v3363_v52  ;;  %1431 = vmatprep.mubr.bf16.mxu1 %v3367_v5  ;;  %v3456_v52 = vld [vmem:[%s3891_s3 + $0x110] ss:$12 sps:$4 sm:$0xff]  }
  0x99   : > { %3009 = vmatpush3.bf16.msra.mxu1 %v3454_v29 }
  0x9a   : > { %3010 = vmatprep.subr.bf16.mxu1 %v3455_v30 }
  0x9b   : > { %1177 = vmatpush1.bf16.msra.mxu0 %v3361_v54  ;;  %v3458_v54 = vld [vmem:[%s3891_s3 + $0x140] ss:$12 sps:$4 sm:$0xff]  }
  0x9c   : > { %1178 = vmatprep.subr.bf16.mxu0 %v3372_v56  ;;  %v3460_v56 = vld [vmem:[%s3891_s3 + $0x170] ss:$12 sps:$4 sm:$0xff]  }
  0x9d   : > { %3011 = vmatpush3.bf16.msra.mxu1 %v3455_v30 }
  0x9e   : > { %1024 = vmatmul.mubr.bf16.gmra.mrb[4].mxu0 %v3357_v55  ;;  %1432 = vmatmul.mubr.bf16.gmra.mrb[16].mxu1 %v3369_v9  ;;  %v3459_v55 = vld [vmem:[%s3891_s3 + $0x158] ss:$12 sps:$4 sm:$0xff]  }
  0x9f   : > { %1033 = vmatprep.mubr.bf16.mxu0 %v3358_v57  ;;  %1179 = vmatpush1.bf16.msra.mxu0 %v3370_v58 }
  0xa0   : > { %1180 = vmatprep.subr.bf16.mxu0 %v3381_v59  ;;  %1439 = vmatprep.mubr.bf16.mxu1 %v3373_v10 }
  0xa3   : > { %1181 = vmatpush1.bf16.msra.mxu0 %v3379_v60 }
  0xa4   : > { %1182 = vmatprep.subr.bf16.mxu0 %v3394_v61 }
  0xa6   : > { %1034 = vmatmul.mubr.bf16.gmra.mrb[8].mxu0 %v3360_v62  ;;  %1440 = vmatmul.mubr.bf16.gmra.mrb[20].mxu1 %v3375_v11 }
  0xa7   : > { %1043 = vmatprep.mubr.bf16.mxu0 %v3364_v63  ;;  %1183 = vmatpush1.bf16.msra.mxu0 %v3392_v0 }
  0xa8   : > { %1184 = vmatprep.subr.bf16.mxu0 %v3411_v1  ;;  %1447 = vmatprep.mubr.bf16.mxu1 %v3376_v12 }
  0xab   : > { %1185 = vmatpush1.bf16.msra.mxu0 %v3409_v2 }
  0xac   : > { %1186 = vmatprep.subr.bf16.mxu0 %v3424_v3 }
  0xae   : > { %1044 = vmatmul.mubr.bf16.gmra.mrb[12].mxu0 %v3366_v4  ;;  %1448 = vmatmul.mubr.bf16.gmra.mrb[24].mxu1 %v3378_v13 }
  0xaf   : > { %1053 = vmatprep.mubr.bf16.mxu0 %v3367_v5  ;;  %1187 = vmatpush1.bf16.msra.mxu0 %v3422_v6 }
  0xb0   : > { %1188 = vmatprep.subr.bf16.mxu0 %v3433_v7  ;;  %1455 = vmatprep.mubr.bf16.mxu1 %v3382_v14 }
  0xb3   : > { %1189 = vmatpush1.bf16.msra.mxu0 %v3431_v8 }
  0xb6   : > { %1054 = vmatmul.mubr.bf16.gmra.mrb[16].mxu0 %v3369_v9  ;;  %1456 = vmatmul.mubr.bf16.gmra.mrb[28].mxu1 %v3384_v15 }
  0xb7   : > { %1063 = vmatprep.mubr.bf16.mxu0 %v3373_v10  ;;  %1463 = vmatprep.mubr.bf16.mxu1 %v3389_v16 }
  0xbe   : > { %1064 = vmatmul.mubr.bf16.gmra.mrb[20].mxu0 %v3375_v11  ;;  %1464 = vmatmul.mubr.bf16.gmra.mrb[32].mxu1 %v3391_v19 }
  0xbf   : > { %1073 = vmatprep.mubr.bf16.mxu0 %v3376_v12  ;;  %1471 = vmatprep.mubr.bf16.mxu1 %v3399_v20 }
  0xc6   : > { %1074 = vmatmul.mubr.bf16.gmra.mrb[24].mxu0 %v3378_v13  ;;  %1472 = vmatmul.mubr.bf16.gmra.mrb[36].mxu1 %v3401_v23 }
  0xc7   : > { %1083 = vmatprep.mubr.bf16.mxu0 %v3382_v14  ;;  %1479 = vmatprep.mubr.bf16.mxu1 %v3406_v24 }
  0xce   : > { %1084 = vmatmul.mubr.bf16.gmra.mrb[28].mxu0 %v3384_v15  ;;  %1480 = vmatmul.mubr.bf16.gmra.mrb[40].mxu1 %v3408_v27 }
  0xcf   : > { %1093 = vmatprep.mubr.bf16.mxu0 %v3389_v16  ;;  %1487 = vmatprep.mubr.bf16.mxu1 %v3416_v28 }
  0xd6   : > { %1094 = vmatmul.mubr.bf16.gmra.mrb[32].mxu0 %v3391_v19  ;;  %1488 = vmatmul.mubr.bf16.gmra.mrb[44].mxu1 %v3418_v31 }
  0xd7   : > { %1103 = vmatprep.mubr.bf16.mxu0 %v3399_v20  ;;  %1495 = vmatprep.mubr.bf16.mxu1 %v3419_v32 }
  0xde   : > { %1104 = vmatmul.mubr.bf16.gmra.mrb[36].mxu0 %v3401_v23  ;;  %1496 = vmatmul.mubr.bf16.gmra.mrb[48].mxu1 %v3421_v33 }
  0xdf   : > { %1113 = vmatprep.mubr.bf16.mxu0 %v3406_v24  ;;  %1503 = vmatprep.mubr.bf16.mxu1 %v3425_v34 }
  0xe6   : > { %1114 = vmatmul.mubr.bf16.gmra.mrb[40].mxu0 %v3408_v27  ;;  %1504 = vmatmul.mubr.bf16.gmra.mrb[52].mxu1 %v3427_v35 }
  0xe7   : > { %1123 = vmatprep.mubr.bf16.mxu0 %v3416_v28  ;;  %1511 = vmatprep.mubr.bf16.mxu1 %v3428_v36 }
  0xee   : > { %1124 = vmatmul.mubr.bf16.gmra.mrb[44].mxu0 %v3418_v31  ;;  %1512 = vmatmul.mubr.bf16.gmra.mrb[56].mxu1 %v3430_v37 }
  0xef   : > { %1133 = vmatprep.mubr.bf16.mxu0 %v3419_v32  ;;  %1519 = vmatprep.mubr.bf16.mxu1 %v3434_v38 }
  0xf6   : > { %1134 = vmatmul.mubr.bf16.gmra.mrb[48].mxu0 %v3421_v33  ;;  %1520 = vmatmul.mubr.bf16.gmra.mrb[60].mxu1 %v3436_v39 }
  0xf7   : > { %1143 = vmatprep.mubr.bf16.mxu0 %v3425_v34  ;;  %3012 = vmatprep.mubr.bf16.mxu1 %v3437_v41 }
  0xfe   : > { %1144 = vmatmul.mubr.bf16.gmra.mrb[52].mxu0 %v3427_v35  ;;  %3013 = vmatmul.mubr.bf16.vlgmr.msra.gmra.mrb[64].mxu1 %v3438_v42 }
  0xff   : > { %1153 = vmatprep.mubr.bf16.mxu0 %v3428_v36  ;;  %3016 = vmatprep.mubr.bf16.mxu1 %v3439_v43 }
 0x106   : > { %1154 = vmatmul.mubr.bf16.gmra.mrb[56].mxu0 %v3430_v37  ;;  %3017 = vmatmul.mubr.bf16.gmra.mrb[68].mxu1 %v3440_v44 }
 0x107   : > { %1163 = vmatprep.mubr.bf16.mxu0 %v3434_v38  ;;  %3020 = vmatprep.mubr.bf16.mxu1 %v3441_v45 }
 0x10e   : > { %1164 = vmatmul.mubr.bf16.gmra.mrb[60].mxu0 %v3436_v39  ;;  %3021 = vmatmul.mubr.bf16.gmra.mrb[72].mxu1 %v3442_v46 }
 0x10f   : > { %1206 = vmatprep.mubr.bf16.mxu0 %v3723_v40  ;;  %3024 = vmatprep.mubr.bf16.mxu1 %v3443_v47 }
 0x116   : > { %1207 = vmatmul.mubr.bf16.vlgmr.msra.gmra.mrb[0].mxu0 %v3437_v41  ;;  %3025 = vmatmul.mubr.bf16.gmra.mrb[76].mxu1 %v3444_v48 }
 0x117   : > { %1216 = vmatprep.mubr.bf16.mxu0 %v3723_v40  ;;  %3028 = vmatprep.mubr.bf16.mxu1 %v3447_v49 }
 0x11e   : > { %1217 = vmatmul.mubr.bf16.gmra.mrb[4].mxu0 %v3438_v42  ;;  %3029 = vmatmul.mubr.bf16.gmra.mrb[80].mxu1 %v3450_v50 }
 0x11f   : > { %1226 = vmatprep.mubr.bf16.mxu0 %v3723_v40  ;;  %3032 = vmatprep.mubr.bf16.mxu1 %v3453_v51 }
 0x126   : > { %1227 = vmatmul.mubr.bf16.gmra.mrb[8].mxu0 %v3439_v43  ;;  %3033 = vmatmul.mubr.bf16.gmra.mrb[84].mxu1 %v3456_v52 }
 0x127   : > { %1236 = vmatprep.mubr.bf16.mxu0 %v3723_v40  ;;  %3036 = vmatprep.mubr.bf16.mxu1 %v3457_v53 }
 0x12e   : > { %1237 = vmatmul.mubr.bf16.gmra.mrb[12].mxu0 %v3440_v44  ;;  %3037 = vmatmul.mubr.bf16.gmra.mrb[88].mxu1 %v3458_v54 }
 0x12f   : > { %1246 = vmatprep.mubr.bf16.mxu0 %v3723_v40  ;;  %3040 = vmatprep.mubr.bf16.mxu1 %v3459_v55 }
 0x136   : > { %1247 = vmatmul.mubr.bf16.gmra.mrb[16].mxu0 %v3441_v45  ;;  %3041 = vmatmul.mubr.bf16.gmra.mrb[92].mxu1 %v3460_v56 }
 0x137   : > { %1256 = vmatprep.mubr.bf16.mxu0 %v3723_v40 }
 0x13e   : > { %1257 = vmatmul.mubr.bf16.gmra.mrb[20].mxu0 %v3442_v46 }
 0x13f   : > { %1266 = vmatprep.mubr.bf16.mxu0 %v3723_v40 }
 0x146   : > { %1267 = vmatmul.mubr.bf16.gmra.mrb[24].mxu0 %v3443_v47 }
 0x147   : > { %1276 = vmatprep.mubr.bf16.mxu0 %v3723_v40 }
 0x14e   : > { %1277 = vmatmul.mubr.bf16.gmra.mrb[28].mxu0 %v3444_v48 }
 0x14f   : > { %1286 = vmatprep.mubr.bf16.mxu0 %v3723_v40 }
 0x151   : > { %v2812_v57 = vpop.f32.mrb[0].mxu1 }
 0x152   : > { %v2813_v58 = vpop.f32.mrb[1].mxu1 }
 0x153   : > { %v2815_v59 = vpop.f32.mrb[2].mxu1  ;;  %v3964_v60 = vadd.f32 %v2813_v58, %v2812_v57 }
 0x154   : > { %v2816_v61 = vpop.f32.mrb[3].mxu1 }
 0x155   : > { %v3966_v62 = vadd.f32 %v2816_v61, %v2815_v59 }
 0x156   : > { %1287 = vmatmul.mubr.bf16.gmra.mrb[32].mxu0 %v3447_v49 }
 0x157   : > { %1296 = vmatprep.mubr.bf16.mxu0 %v3723_v40 }
 0x159   : > { %v2818_v63 = vpop.f32.mrb[4].mxu1 }
 0x15a   : > { %v2819_v0 = vpop.f32.mrb[5].mxu1 }
 0x15b   : > { %v3969_v1 = vadd.f32 %v2819_v0, %v2818_v63  ;;  %v2821_v2 = vpop.f32.mrb[6].mxu1 }
 0x15c   : > { %v2822_v3 = vpop.f32.mrb[7].mxu1 }
 0x15d   : > { %v3971_v4 = vadd.f32 %v2822_v3, %v2821_v2 }
 0x15e   : > { %1297 = vmatmul.mubr.bf16.gmra.mrb[36].mxu0 %v3450_v50 }
 0x15f   : > { %1306 = vmatprep.mubr.bf16.mxu0 %v3723_v40 }
 0x161   : > { %v2824_v5 = vpop.f32.mrb[8].mxu1 }
 0x162   : > { %v2825_v6 = vpop.f32.mrb[9].mxu1 }
 0x163   : > { %v2827_v7 = vpop.f32.mrb[10].mxu1  ;;  %v3973_v8 = vadd.f32 %v2825_v6, %v2824_v5 }
 0x164   : > { %v2828_v9 = vpop.f32.mrb[11].mxu1 }
 0x165   : > { %v3975_v10 = vadd.f32 %v2828_v9, %v2827_v7 }
 0x166   : > { %1307 = vmatmul.mubr.bf16.gmra.mrb[40].mxu0 %v3453_v51 }
 0x167   : > { %1316 = vmatprep.mubr.bf16.mxu0 %v3723_v40 }
 0x169   : > { %v2830_v11 = vpop.f32.mrb[12].mxu1 }
 0x16a   : > { %v2831_v12 = vpop.f32.mrb[13].mxu1 }
 0x16b   : > { %v3977_v13 = vadd.f32 %v2831_v12, %v2830_v11  ;;  %v2833_v14 = vpop.f32.mrb[14].mxu1 }
 0x16c   : > { %v2834_v15 = vpop.f32.mrb[15].mxu1 }
 0x16d   : > { %v3979_v16 = vadd.f32 %v2834_v15, %v2833_v14 }
 0x16e   : > { %1317 = vmatmul.mubr.bf16.gmra.mrb[44].mxu0 %v3456_v52 }
 0x16f   : > { %1326 = vmatprep.mubr.bf16.mxu0 %v3723_v40 }
 0x171   : > { %v2836_v17 = vpop.f32.mrb[16].mxu1 }
 0x172   : > { %v2837_v18 = vpop.f32.mrb[17].mxu1 }
 0x173   : > { %v2839_v19 = vpop.f32.mrb[18].mxu1  ;;  %v3981_v20 = vadd.f32 %v2837_v18, %v2836_v17 }
 0x174   : > { %v2840_v21 = vpop.f32.mrb[19].mxu1 }
 0x175   : > { %v3983_v22 = vadd.f32 %v2840_v21, %v2839_v19 }
 0x176   : > { %1327 = vmatmul.mubr.bf16.gmra.mrb[48].mxu0 %v3457_v53 }
 0x177   : > { %1336 = vmatprep.mubr.bf16.mxu0 %v3723_v40 }
 0x179   : > { %v2842_v23 = vpop.f32.mrb[20].mxu1 }
 0x17a   : > { %v2843_v24 = vpop.f32.mrb[21].mxu1 }
 0x17b   : > { %v3985_v25 = vadd.f32 %v2843_v24, %v2842_v23  ;;  %v2845_v26 = vpop.f32.mrb[22].mxu1 }
 0x17c   : > { %v2846_v27 = vpop.f32.mrb[23].mxu1 }
 0x17d   : > { %v3987_v28 = vadd.f32 %v2846_v27, %v2845_v26 }
 0x17e   : > { %1337 = vmatmul.mubr.bf16.gmra.mrb[52].mxu0 %v3458_v54 }
 0x17f   : > { %1346 = vmatprep.mubr.bf16.mxu0 %v3723_v40 }
 0x181   : > { %v2848_v29 = vpop.f32.mrb[24].mxu1 }
 0x182   : > { %v2849_v30 = vpop.f32.mrb[25].mxu1 }
 0x183   : > { %v3989_v31 = vadd.f32 %v2849_v30, %v2848_v29  ;;  %v2851_v32 = vpop.f32.mrb[26].mxu1 }
 0x184   : > { %v2852_v33 = vpop.f32.mrb[27].mxu1 }
 0x185   : > { %v3991_v34 = vadd.f32 %v2852_v33, %v2851_v32 }
 0x186   : > { %1347 = vmatmul.mubr.bf16.gmra.mrb[56].mxu0 %v3459_v55 }
 0x187   : > { %1356 = vmatprep.mubr.bf16.mxu0 %v3723_v40 }
 0x189   : > { %v2854_v35 = vpop.f32.mrb[28].mxu1 }
 0x18a   : > { %v2855_v36 = vpop.f32.mrb[29].mxu1 }
 0x18b   : > { %v3993_v37 = vadd.f32 %v2855_v36, %v2854_v35  ;;  %v2857_v38 = vpop.f32.mrb[30].mxu1 }
 0x18c   : > { %v2858_v39 = vpop.f32.mrb[31].mxu1 }
 0x18d   : > { %v3995_v40 = vadd.f32 %v2858_v39, %v2857_v38 }
 0x18e   : > { %1357 = vmatmul.mubr.bf16.gmra.mrb[60].mxu0 %v3460_v56 }
 0x191   : > { %v2860_v41 = vpop.f32.mrb[32].mxu1 }
 0x192   : > { %v2861_v42 = vpop.f32.mrb[33].mxu1 }
 0x193   : > { %v3997_v43 = vadd.f32 %v2861_v42, %v2860_v41  ;;  %v2863_v44 = vpop.f32.mrb[34].mxu1 }
 0x194   : > { %v2864_v45 = vpop.f32.mrb[35].mxu1 }
 0x195   : > { %v3999_v46 = vadd.f32 %v2864_v45, %v2863_v44 }
 0x199   : > { %v2866_v47 = vpop.f32.mrb[36].mxu1 }
 0x19a   : > { %v2867_v48 = vpop.f32.mrb[37].mxu1 }
 0x19b   : > { %v4001_v49 = vadd.f32 %v2867_v48, %v2866_v47  ;;  %v2869_v50 = vpop.f32.mrb[38].mxu1 }
 0x19c   : > { %v2870_v51 = vpop.f32.mrb[39].mxu1 }
 0x19d   : > { %v4003_v52 = vadd.f32 %v2870_v51, %v2869_v50 }
 0x1a1   : > { %v2872_v53 = vpop.f32.mrb[40].mxu1 }
 0x1a2   : > { %v2873_v54 = vpop.f32.mrb[41].mxu1 }
 0x1a3   : > { %v4005_v55 = vadd.f32 %v2873_v54, %v2872_v53  ;;  %v2875_v56 = vpop.f32.mrb[42].mxu1 }
 0x1a4   : > { %v2876_v57 = vpop.f32.mrb[43].mxu1 }
 0x1a5   : > { %v4007_v58 = vadd.f32 %v2876_v57, %v2875_v56 }
 0x1a9   : > { %v2878_v59 = vpop.f32.mrb[44].mxu1 }
 0x1aa   : > { %v2879_v61 = vpop.f32.mrb[45].mxu1 }
 0x1ab   : > { %v4009_v63 = vadd.f32 %v2879_v61, %v2878_v59  ;;  %v2881_v0 = vpop.f32.mrb[46].mxu1 }
 0x1ac   : > { %v2882_v2 = vpop.f32.mrb[47].mxu1 }
 0x1ad   : > { %v4011_v3 = vadd.f32 %v2882_v2, %v2881_v0 }
 0x1b1   : > { %v2884_v5 = vpop.f32.mrb[48].mxu1 }
 0x1b2   : > { %v2885_v6 = vpop.f32.mrb[49].mxu1 }
 0x1b3   : > { %v4013_v7 = vadd.f32 %v2885_v6, %v2884_v5  ;;  %v2887_v9 = vpop.f32.mrb[50].mxu1 }
 0x1b4   : > { %v2888_v11 = vpop.f32.mrb[51].mxu1 }
 0x1b5   : > { %v4015_v12 = vadd.f32 %v2888_v11, %v2887_v9 }
 0x1b9   : > { %v2890_v14 = vpop.f32.mrb[52].mxu1 }
 0x1ba   : > { %v2891_v15 = vpop.f32.mrb[53].mxu1 }
 0x1bb   : > { %v4017_v17 = vadd.f32 %v2891_v15, %v2890_v14  ;;  %v2893_v18 = vpop.f32.mrb[54].mxu1 }
 0x1bc   : > { %v2894_v19 = vpop.f32.mrb[55].mxu1 }
 0x1bd   : > { %v4019_v21 = vadd.f32 %v2894_v19, %v2893_v18 }
 0x1c1   : > { %v2896_v23 = vpop.f32.mrb[56].mxu1 }
 0x1c2   : > { %v2897_v24 = vpop.f32.mrb[57].mxu1 }
 0x1c3   : > { %v4021_v26 = vadd.f32 %v2897_v24, %v2896_v23  ;;  %v2899_v27 = vpop.f32.mrb[58].mxu1 }
 0x1c4   : > { %v2900_v29 = vpop.f32.mrb[59].mxu1 }
 0x1c5   : > { %v4023_v30 = vadd.f32 %v2900_v29, %v2899_v27 }
 0x1c9   : > { %v2902_v32 = vpop.f32.mrb[60].mxu1 }
 0x1ca   : > { %v2903_v33 = vpop.f32.mrb[61].mxu1 }
 0x1cb   : > { %v4025_v36 = vadd.f32 %v2903_v33, %v2902_v32  ;;  %v2905_v38 = vpop.f32.mrb[62].mxu1 }
 0x1cc   : > { %v2906_v41 = vpop.f32.mrb[63].mxu1 }
 0x1cd   : > { %v4027_v44 = vadd.f32 %v2906_v41, %v2905_v38 }
 0x1d1   : > { %v3014_v50 = vpop.f32.mrb[64].mxu1 }
 0x1d2   : > { %v1571_v51 = vadd.f32 %v3014_v50, %v3969_v1  ;;  %v1562_v53 = vpop.f32.mrb[65].mxu1 }
 0x1d3   : > { %v1563_v56 = vadd.f32 %v3964_v60, %v1562_v53  ;;  %v3015_v57 = vpop.f32.mrb[66].mxu1 }
 0x1d4   : > { %v1574_v61 = vadd.f32 %v3015_v57, %v3971_v4  ;;  %v1565_v0 = vpop.f32.mrb[67].mxu1 }
 0x1d5   : > { %v1566_v5 = vadd.f32 %v3966_v62, %v1565_v0 }
 0x1d6   : > { %v1722_v11 = vpack.c.bf16 %v1574_v61, %v1571_v51 }
 0x1d7   : > { %v1721_v14 = vpack.c.bf16 %v1566_v5, %v1563_v56 }
 0x1d9   : > { %3108 = vmatprep.subr.bf16.mxu0 %v1721_v14  ;;  %v3018_v15 = vpop.f32.mrb[68].mxu1 }
 0x1da   : > { %3109 = vmatpush3.bf16.msra.mxu0 %v1721_v14  ;;  %v1587_v60 = vadd.f32 %v3018_v15, %v3977_v13  ;;  %v1578_v4 = vpop.f32.mrb[69].mxu1 }
 0x1db   : > { %3110 = vmatprep.subr.bf16.mxu0 %v1722_v11  ;;  %v1579_v62 = vadd.f32 %v3973_v8, %v1578_v4  ;;  %v3019_v19 = vpop.f32.mrb[70].mxu1 }
 0x1dc   : > { %v1590_v24 = vadd.f32 %v3019_v19, %v3979_v16  ;;  %v1581_v27 = vpop.f32.mrb[71].mxu1 }
 0x1dd   : > { %v1582_v32 = vadd.f32 %v3975_v10, %v1581_v27 }
 0x1de   : > { %3111 = vmatpush3.bf16.msra.mxu0 %v1722_v11  ;;  %v1724_v13 = vpack.c.bf16 %v1590_v24, %v1587_v60 }
 0x1e1   : > { %v3022_v8 = vpop.f32.mrb[72].mxu1 }
 0x1e2   : > { %v1603_v16 = vadd.f32 %v3022_v8, %v3985_v25  ;;  %v1594_v41 = vpop.f32.mrb[73].mxu1 }
 0x1e3   : > { %v1595_v10 = vadd.f32 %v3981_v20, %v1594_v41 }
 0x1e9   : > { %v1208_v35 = vpop.f32.mrb[0].mxu0 }
 0x1ea   : > { %v1210_v39 = vpop.f32.mrb[1].mxu0 }
 0x1eb   : > { %v1212_v42 = vpop.f32.mrb[2].mxu0 }
 0x1ec   : > { %v1689_v45 = vpack.c.bf16 %v1212_v42, %v1208_v35  ;;  %v1214_v47 = vpop.f32.mrb[3].mxu0 }
 0x1ed   : > { %v1705_v48 = vpack.c.bf16 %v1214_v47, %v1210_v39  ;;  %v1723_v39 = vpack.c.bf16 %v1582_v32, %v1579_v62 }
 0x1ee   : > { %3060 = vmatprep.mubr.bf16.mxu1 %v1689_v45  ;;  %v3023_v45 = vpop.f32.mrb[74].mxu1 }
 0x1ef   : > { %3044 = vmatprep.subr.bf16.mxu1 %v1705_v48  ;;  %3112 = vmatprep.subr.bf16.mxu0 %v1723_v39  ;;  %v1597_v50 = vpop.f32.mrb[75].mxu1 }
 0x1f0   : > { %3045 = vmatpush3.bf16.xpose.msra.mxu1 %v1705_v48  ;;  %3113 = vmatpush3.bf16.msra.mxu0 %v1723_v39  ;;  %v1606_v48 = vadd.f32 %v3023_v45, %v3987_v28  ;;  %v1598_v53 = vadd.f32 %v3983_v22, %v1597_v50  ;;  %v3026_v20 = vpop.f32.mrb[76].mxu1 }
 0x1f1   : > { %v4030_v54 = vpop.f32.mrb[4].mxu0  ;;  %3114 = vmatprep.subr.bf16.mxu0 %v1724_v13  ;;  %v1619_v28 = vadd.f32 %v3026_v20, %v3993_v37  ;;  %v1610_v0 = vpop.f32.mrb[77].mxu1 }
 0x1f2   : > { %v1220_v59 = vpop.f32.mrb[5].mxu0  ;;  %v1726_v25 = vpack.c.bf16 %v1606_v48, %v1603_v16  ;;  %v1725_v61 = vpack.c.bf16 %v1598_v53, %v1595_v10  ;;  %v1611_v22 = vadd.f32 %v3989_v31, %v1610_v0 }
 0x1f3   : > { %v4034_v2 = vpop.f32.mrb[6].mxu0 }
 0x1f4   : > { %v1690_v6 = vpack.c.bf16 %v4034_v2, %v4030_v54  ;;  %v1224_v9 = vpop.f32.mrb[7].mxu0  ;;  %3115 = vmatpush3.bf16.msra.mxu0 %v1724_v13 }
 0x1f5   : > { %v1706_v1 = vpack.c.bf16 %v1224_v9, %v1220_v59  ;;  %3116 = vmatprep.subr.bf16.mxu0 %v1725_v61  ;;  %v3027_v9 = vpop.f32.mrb[78].mxu1 }
 0x1f6   : > { %v1613_v14 = vpop.f32.mrb[79].mxu1 }
 0x1f7   : > { %3046 = vmatprep.subr.bf16.mxu1 %v1706_v1  ;;  %v1614_v60 = vadd.f32 %v3991_v34, %v1613_v14  ;;  %v3030_v31 = vpop.f32.mrb[80].mxu1 }
 0x1f8   : > { %3047 = vmatpush3.bf16.xpose.msra.mxu1 %v1706_v1  ;;  %3117 = vmatpush3.bf16.msra.mxu0 %v1725_v61  ;;  %v1622_v1 = vadd.f32 %v3027_v9, %v3995_v40  ;;  %v1635_v40 = vadd.f32 %v3030_v31, %v4001_v49  ;;  %v1626_v24 = vpop.f32.mrb[81].mxu1 }
 0x1f9   : > { %v4040_v18 = vpop.f32.mrb[8].mxu0  ;;  %3118 = vmatprep.subr.bf16.mxu0 %v1726_v25  ;;  %v1627_v34 = vadd.f32 %v3997_v43, %v1626_v24  ;;  %v3031_v32 = vpop.f32.mrb[82].mxu1 }
 0x1fa   : > { %v1230_v23 = vpop.f32.mrb[9].mxu0  ;;  %v1728_v37 = vpack.c.bf16 %v1622_v1, %v1619_v28  ;;  %v1638_v13 = vadd.f32 %v3031_v32, %v4003_v52 }
 0x1fb   : > { %v4044_v29 = vpop.f32.mrb[10].mxu0 }
 0x1fc   : > { %v1691_v33 = vpack.c.bf16 %v4044_v29, %v4040_v18  ;;  %v1234_v35 = vpop.f32.mrb[11].mxu0  ;;  %3119 = vmatpush3.bf16.msra.mxu0 %v1726_v25  ;;  %v4079_v49 = vpack.c.bf16 %v1638_v13, %v1635_v40 }
 0x1fd   : > { %v1707_v38 = vpack.c.bf16 %v1234_v35, %v1230_v23  ;;  %v1727_v23 = vpack.c.bf16 %v1614_v60, %v1611_v22 }
 0x1ff   : > { %3048 = vmatprep.subr.bf16.mxu1 %v1707_v38  ;;  %3120 = vmatprep.subr.bf16.mxu0 %v1727_v23 }
 0x200   : > { %3049 = vmatpush3.bf16.xpose.msra.mxu1 %v1707_v38  ;;  %3121 = vmatpush3.bf16.msra.mxu0 %v1727_v23  ;;  %v1629_v38 = vpop.f32.mrb[83].mxu1 }
 0x201   : > { %v4050_v42 = vpop.f32.mrb[12].mxu0  ;;  %3122 = vmatprep.subr.bf16.mxu0 %v1728_v37  ;;  %v1630_v8 = vadd.f32 %v3999_v46, %v1629_v38  ;;  %v3034_v43 = vpop.f32.mrb[84].mxu1 }
 0x202   : > { %v1240_v47 = vpop.f32.mrb[13].mxu0  ;;  %v1651_v52 = vadd.f32 %v3034_v43, %v4009_v63 }
 0x203   : > { %v4054_v51 = vpop.f32.mrb[14].mxu0  ;;  %v4081_v45 = vpack.c.bf16 %v1630_v8, %v1627_v34 }
 0x204   : > { %v1692_v56 = vpack.c.bf16 %v4054_v51, %v4050_v42  ;;  %v1244_v57 = vpop.f32.mrb[15].mxu0  ;;  %3123 = vmatpush3.bf16.msra.mxu0 %v1728_v37 }
 0x205   : > { %v1708_v59 = vpack.c.bf16 %v1244_v57, %v1240_v47  ;;  %v1642_v47 = vpop.f32.mrb[85].mxu1 }
 0x206   : > { %v1643_v46 = vadd.f32 %v4005_v55, %v1642_v47  ;;  %v3035_v50 = vpop.f32.mrb[86].mxu1 }
 0x207   : > { %3050 = vmatprep.subr.bf16.mxu1 %v1708_v59  ;;  %v1654_v57 = vadd.f32 %v3035_v50, %v4011_v3  ;;  %v1645_v25 = vpop.f32.mrb[87].mxu1 }
 0x208   : > { %3051 = vmatpush3.bf16.xpose.msra.mxu1 %v1708_v59  ;;  %v1646_v61 = vadd.f32 %v4007_v58, %v1645_v25  ;;  %v3038_v55 = vpop.f32.mrb[88].mxu1 }
 0x209   : > { %v4060_v5 = vpop.f32.mrb[16].mxu0  ;;  %v4093_v0 = vpack.c.bf16 %v1654_v57, %v1651_v52  ;;  %v1667_v9 = vadd.f32 %v3038_v55, %v4017_v17  ;;  %v1658_v3 = vpop.f32.mrb[89].mxu1 }
 0x20a   : > { %v1250_v11 = vpop.f32.mrb[17].mxu0  ;;  %v4095_v22 = vpack.c.bf16 %v1646_v61, %v1643_v46  ;;  %v1659_v1 = vadd.f32 %v4013_v7, %v1658_v3  ;;  %v3039_v14 = vpop.f32.mrb[90].mxu1 }
 0x20b   : > { %v4064_v15 = vpop.f32.mrb[18].mxu0  ;;  %v1670_v60 = vadd.f32 %v3039_v14, %v4019_v21 }
 0x20c   : > { %v1693_v4 = vpack.c.bf16 %v4064_v15, %v4060_v5  ;;  %v1254_v62 = vpop.f32.mrb[19].mxu0 }
 0x20d   : > { %v1709_v19 = vpack.c.bf16 %v1254_v62, %v1250_v11  ;;  %v1661_v62 = vpop.f32.mrb[91].mxu1  ;;  %v4101_v40 = vpack.c.bf16 %v1670_v60, %v1667_v9 }
 0x20e   : > { %v3042_v17 = vpop.f32.mrb[92].mxu1 }
 0x20f   : > { %3052 = vmatprep.subr.bf16.mxu1 %v1709_v19  ;;  %v1683_v7 = vadd.f32 %v3042_v17, %v4025_v36  ;;  %v1674_v32 = vpop.f32.mrb[93].mxu1 }
 0x210   : > { %3053 = vmatpush3.bf16.xpose.msra.mxu1 %v1709_v19  ;;  %v1662_v19 = vadd.f32 %v4015_v12, %v1661_v62  ;;  %v1675_v21 = vadd.f32 %v4021_v26, %v1674_v32  ;;  %v3043_v13 = vpop.f32.mrb[94].mxu1 }
 0x211   : > { %v4070_v27 = vpop.f32.mrb[20].mxu0  ;;  %v1686_v12 = vadd.f32 %v3043_v13, %v4027_v44  ;;  %v1677_v8 = vpop.f32.mrb[95].mxu1 }
 0x212   : > { %v1260_v35 = vpop.f32.mrb[21].mxu0  ;;  %v4103_v34 = vpack.c.bf16 %v1662_v19, %v1659_v1 }
 0x213   : > { %v4074_v39 = vpop.f32.mrb[22].mxu0  ;;  %v4109_v47 = vpack.c.bf16 %v1686_v12, %v1683_v7 }
 0x214   : > { %v1694_v16 = vpack.c.bf16 %v4074_v39, %v4070_v27  ;;  %v1264_v41 = vpop.f32.mrb[23].mxu0 }
 0x215   : > { %v1710_v10 = vpack.c.bf16 %v1264_v41, %v1260_v35 }
 0x217   : > { %3054 = vmatprep.subr.bf16.mxu1 %v1710_v10 }
 0x218   : > { %3055 = vmatpush3.bf16.xpose.msra.mxu1 %v1710_v10  ;;  %v1678_v10 = vadd.f32 %v4023_v30, %v1677_v8 }
 0x219   : > { %v4084_v48 = vpop.f32.mrb[24].mxu0 }
 0x21a   : > { %v1270_v53 = vpop.f32.mrb[25].mxu0  ;;  %v4111_v46 = vpack.c.bf16 %v1678_v10, %v1675_v21 }
 0x21b   : > { %v4088_v59 = vpop.f32.mrb[26].mxu0 }
 0x21c   : > { %v1695_v20 = vpack.c.bf16 %v4088_v59, %v4084_v48  ;;  %v1274_v28 = vpop.f32.mrb[27].mxu0 }
 0x21d   : > { %v1711_v63 = vpack.c.bf16 %v1274_v28, %v1270_v53 }
 0x21f   : > { %3056 = vmatprep.subr.bf16.mxu1 %v1711_v63 }
 0x220   : > { %3057 = vmatpush3.bf16.xpose.msra.mxu1 %v1711_v63 }
 0x221   : > { %v1278_v11 = vpop.f32.mrb[28].mxu0 }
 0x222   : > { %v1280_v58 = vpop.f32.mrb[29].mxu0 }
 0x223   : > { %v1282_v37 = vpop.f32.mrb[30].mxu0 }
 0x224   : > { %v1696_v23 = vpack.c.bf16 %v1282_v37, %v1278_v11  ;;  %v1284_v31 = vpop.f32.mrb[31].mxu0 }
 0x225   : > { %v1712_v24 = vpack.c.bf16 %v1284_v31, %v1280_v58 }
 0x227   : > { %3058 = vmatprep.subr.bf16.mxu1 %v1712_v24 }
 0x228   : > { %3059 = vmatpush3.bf16.xpose.msra.mxu1 %v1712_v24 }
 0x229   : > { %v1288_v35 = vpop.f32.mrb[32].mxu0 }
 0x22a   : > { %v1290_v38 = vpop.f32.mrb[33].mxu0 }
 0x22b   : > { %v1292_v41 = vpop.f32.mrb[34].mxu0 }
 0x22c   : > { %v1697_v43 = vpack.c.bf16 %v1292_v41, %v1288_v35  ;;  %v1294_v52 = vpop.f32.mrb[35].mxu0 }
 0x22d   : > { %v1713_v48 = vpack.c.bf16 %v1294_v52, %v1290_v38 }
 0x22f   : > { %3061 = vmatmul.mubr.bf16.vlgmr.msra.gmra.mrb[96].mxu1 %v1690_v6  ;;  %3076 = vmatprep.subr.bf16.mxu1 %v1713_v48 }
 0x230   : > { %3064 = vmatprep.mubr.bf16.mxu1 %v1691_v33  ;;  %3077 = vmatpush3.bf16.xpose.msra.mxu1 %v1713_v48 }
 0x231   : > { %v4119_v26 = vpop.f32.mrb[36].mxu0 }
 0x232   : > { %v1300_v30 = vpop.f32.mrb[37].mxu0 }
 0x233   : > { %v1302_v36 = vpop.f32.mrb[38].mxu0 }
 0x234   : > { %v1698_v44 = vpack.c.bf16 %v1302_v36, %v4119_v26  ;;  %v1304_v50 = vpop.f32.mrb[39].mxu0 }
 0x235   : > { %v1714_v53 = vpack.c.bf16 %v1304_v50, %v1300_v30 }
 0x237   : > { %3065 = vmatmul.mubr.bf16.gmra.mrb[100].mxu1 %v1692_v56  ;;  %3078 = vmatprep.subr.bf16.mxu1 %v1714_v53 }
 0x238   : > { %3068 = vmatprep.mubr.bf16.mxu1 %v1693_v4  ;;  %3079 = vmatpush3.bf16.xpose.msra.mxu1 %v1714_v53 }
 0x239   : > { %v1308_v54 = vpop.f32.mrb[40].mxu0 }
 0x23a   : > { %v1310_v2 = vpop.f32.mrb[41].mxu0 }
 0x23b   : > { %v1312_v6 = vpop.f32.mrb[42].mxu0 }
 0x23c   : > { %v1699_v18 = vpack.c.bf16 %v1312_v6, %v1308_v54  ;;  %v1314_v29 = vpop.f32.mrb[43].mxu0 }
 0x23d   : > { %v1715_v33 = vpack.c.bf16 %v1314_v29, %v1310_v2 }
 0x23f   : > { %3069 = vmatmul.mubr.bf16.gmra.mrb[104].mxu1 %v1694_v16  ;;  %3080 = vmatprep.subr.bf16.mxu1 %v1715_v33 }
 0x240   : > { %3072 = vmatprep.mubr.bf16.mxu1 %v1695_v20  ;;  %3081 = vmatpush3.bf16.xpose.msra.mxu1 %v1715_v33 }
 0x241   : > { %v1318_v42 = vpop.f32.mrb[44].mxu0 }
 0x242   : > { %v1320_v51 = vpop.f32.mrb[45].mxu0 }
 0x243   : > { %v1322_v56 = vpop.f32.mrb[46].mxu0 }
 0x244   : > { %v1700_v57 = vpack.c.bf16 %v1322_v56, %v1318_v42  ;;  %v1324_v5 = vpop.f32.mrb[47].mxu0 }
 0x245   : > { %v1716_v15 = vpack.c.bf16 %v1324_v5, %v1320_v51 }
 0x247   : > { %3073 = vmatmul.mubr.bf16.gmra.mrb[108].mxu1 %v1696_v23  ;;  %3082 = vmatprep.subr.bf16.mxu1 %v1716_v15 }
 0x248   : > { %3083 = vmatpush3.bf16.xpose.msra.mxu1 %v1716_v15  ;;  %3092 = vmatprep.mubr.bf16.mxu1 %v1697_v43 }
 0x249   : > { %v1328_v4 = vpop.f32.mrb[48].mxu0 }
 0x24a   : > { %v1330_v25 = vpop.f32.mrb[49].mxu0 }
 0x24b   : > { %v1332_v59 = vpop.f32.mrb[50].mxu0 }
 0x24c   : > { %v1701_v61 = vpack.c.bf16 %v1332_v59, %v1328_v4  ;;  %v1334_v28 = vpop.f32.mrb[51].mxu0 }
 0x24d   : > { %v1717_v27 = vpack.c.bf16 %v1334_v28, %v1330_v25 }
 0x24f   : > { %3084 = vmatprep.subr.bf16.mxu1 %v1717_v27 }
 0x250   : > { %3085 = vmatpush3.bf16.xpose.msra.mxu1 %v1717_v27 }
 0x251   : > { %v1338_v39 = vpop.f32.mrb[52].mxu0 }
 0x252   : > { %v1340_v16 = vpop.f32.mrb[53].mxu0 }
 0x253   : > { %v1342_v20 = vpop.f32.mrb[54].mxu0 }
 0x254   : > { %v1702_v63 = vpack.c.bf16 %v1342_v20, %v1338_v39  ;;  %v1344_v55 = vpop.f32.mrb[55].mxu0 }
 0x255   : > { %v1718_v9 = vpack.c.bf16 %v1344_v55, %v1340_v16 }
 0x257   : > { %3086 = vmatprep.subr.bf16.mxu1 %v1718_v9 }
 0x258   : > { %3087 = vmatpush3.bf16.xpose.msra.mxu1 %v1718_v9 }
 0x259   : > { %v1348_v3 = vpop.f32.mrb[56].mxu0 }
 0x25a   : > { %v1350_v11 = vpop.f32.mrb[57].mxu0 }
 0x25b   : > { %v1352_v1 = vpop.f32.mrb[58].mxu0 }
 0x25c   : > { %v1703_v14 = vpack.c.bf16 %v1352_v1, %v1348_v3  ;;  %v1354_v58 = vpop.f32.mrb[59].mxu0 }
 0x25d   : > { %v1719_v60 = vpack.c.bf16 %v1354_v58, %v1350_v11 }
 0x25f   : > { %3088 = vmatprep.subr.bf16.mxu1 %v1719_v60 }
 0x260   : > { %3089 = vmatpush3.bf16.xpose.msra.mxu1 %v1719_v60 }
 0x261   : > { %v1358_v62 = vpop.f32.mrb[60].mxu0 }
 0x262   : > { %v1360_v37 = vpop.f32.mrb[61].mxu0 }
 0x263   : > { %v1362_v19 = vpop.f32.mrb[62].mxu0 }
 0x264   : > { %v1704_v23 = vpack.c.bf16 %v1362_v19, %v1358_v62  ;;  %v1364_v31 = vpop.f32.mrb[63].mxu0 }
 0x265   : > { %v1720_v24 = vpack.c.bf16 %v1364_v31, %v1360_v37 }
 0x267   : > { %3090 = vmatprep.subr.bf16.mxu1 %v1720_v24 }
 0x268   : > { %3091 = vmatpush3.bf16.xpose.msra.mxu1 %v1720_v24 }
 0x269   : > { %3140 = vmatprep.subr.bf16.mxu1 %v4081_v45 }
 0x26f   : > { %3093 = vmatmul.mubr.bf16.vlgmr.msra.gmra.mrb[112].mxu1 %v1698_v44 }
 0x270   : > { %3096 = vmatprep.mubr.bf16.mxu1 %v1699_v18  ;;  %3141 = vmatpush3.bf16.msra.mxu1 %v4081_v45 }
 0x271   : > { %3142 = vmatprep.subr.bf16.mxu1 %v4079_v49 }
 0x274   : > { %3143 = vmatpush3.bf16.msra.mxu1 %v4079_v49  ;;  %v1737_v49 = vlaneseq }
 0x275   : > { %3144 = vmatprep.subr.bf16.mxu1 %v4095_v22 }
 0x276   : > { %v4147_v45 = vshrl.u32 %v1737_v49, 7 }
 0x277   : > { %3097 = vmatmul.mubr.bf16.gmra.mrb[116].mxu1 %v1700_v57 }
 0x278   : > { %3100 = vmatprep.mubr.bf16.mxu1 %v1701_v61  ;;  %3145 = vmatpush3.bf16.msra.mxu1 %v4095_v22  ;;  %v4152_v22 = vadd.s32 112, %v4147_v45  ;;  %v4165_v17 = vadd.s32 24, %v4147_v45  ;;  %v4180_v13 = vadd.s32 8, %v4147_v45  ;;  %v4189_v8 = vadd.s32 56, %v4147_v45 }
 0x279   : > { %3146 = vmatprep.subr.bf16.mxu1 %v4093_v0  ;;  %v4200_v10 = vadd.s32 48, %v4147_v45  ;;  %v4205_v52 = vadd.s32 40, %v4147_v45  ;;  %v4216_v26 = vadd.s32 32, %v4147_v45  ;;  %v4227_v44 = vadd.s32 88, %v4147_v45 }
 0x27a   : > { %v4238_v53 = vadd.s32 80, %v4147_v45  ;;  %v4249_v6 = vadd.s32 72, %v4147_v45  ;;  %v1746_v42 = vadd.s32 64, %v4147_v45  ;;  %v4274_v5 = vadd.s32 104, %v4147_v45 }
 0x27b   : > { %v1750_v15 = vadd.s32 96, %v4147_v45 }
 0x27c   : > { %3147 = vmatpush3.bf16.msra.mxu1 %v4093_v0  ;;  %v4149_v0 = vand.u32 127, %v1737_v49 }
 0x27d   : > { %3148 = vmatprep.subr.bf16.mxu1 %v4103_v34 }
 0x27e   : > { %vm1770_vm0 = vcmp.ge.s32.totalorder %v4152_v22, %v4149_v0  ;;  %vm1759_vm3 = vcmp.ge.s32.totalorder %v4165_v17, %v4149_v0  ;;  %vm1756_vm4 = vcmp.ge.s32.totalorder %v4147_v45, %v4149_v0  ;;  %vm1757_vm5 = vcmp.ge.s32.totalorder %v4180_v13, %v4149_v0 }
 0x27f   : > { %3101 = vmatmul.mubr.bf16.gmra.mrb[120].mxu1 %v1702_v63  ;;  %vm1763_vm6 = vcmp.ge.s32.totalorder %v4189_v8, %v4149_v0  ;;  %vm1762_vm7 = vcmp.ge.s32.totalorder %v4200_v10, %v4149_v0  ;;  %vm1761_vm8 = vcmp.ge.s32.totalorder %v4205_v52, %v4149_v0  ;;  %vm1760_vm9 = vcmp.ge.s32.totalorder %v4216_v26, %v4149_v0 }
 0x280   : > { %3104 = vmatprep.mubr.bf16.mxu1 %v1703_v14  ;;  %3149 = vmatpush3.bf16.msra.mxu1 %v4103_v34  ;;  %v4162_v34 = vadd.s32 16, %v4147_v45  ;;  %vm1767_vm10 = vcmp.ge.s32.totalorder %v4227_v44, %v4149_v0  ;;  %vm1766_vm11 = vcmp.ge.s32.totalorder %v4238_v53, %v4149_v0  ;;  %vm1765_vm12 = vcmp.ge.s32.totalorder %v4249_v6, %v4149_v0 }
 0x281   : > { %3150 = vmatprep.subr.bf16.mxu1 %v4101_v40  ;;  %vm1764_vm13 = vcmp.ge.s32.totalorder %v1746_v42, %v4149_v0  ;;  %vm1769_vm14 = vcmp.ge.s32.totalorder %v4274_v5, %v4149_v0  ;;  %vm1768_vm15 = vcmp.ge.s32.totalorder %v1750_v15, %v4149_v0 }
 0x282   : > { %vm1758_vm2 = vcmp.ge.s32.totalorder %v4162_v34, %v4149_v0 }
 0x284   : > { %3151 = vmatpush3.bf16.msra.mxu1 %v4101_v40  ;;  %v4157_v40 = vadd.s32 120, %v4147_v45 }
 0x285   : > { %3152 = vmatprep.subr.bf16.mxu1 %v4111_v46 }
 0x286   : > { %vm1771_vm1 = vcmp.ge.s32.totalorder %v4157_v40, %v4149_v0 }
 0x287   : > { %3105 = vmatmul.mubr.bf16.gmra.mrb[124].mxu1 %v1704_v23 }
 0x288   : > { %3153 = vmatpush3.bf16.msra.mxu1 %v4111_v46 }
 0x289   : > { %3154 = vmatprep.subr.bf16.mxu1 %v4109_v47 }
 0x28c   : > { %3155 = vmatpush3.bf16.msra.mxu1 %v4109_v47 }
 0x302   : > { %v3062_v7 = vpop.f32.mrb[96].mxu1 }
 0x303   : > { %v1806_v32 = vpop.f32.mrb[97].mxu1  ;;  %v4174_v35 = vsel %vm1758_vm2, %v3062_v7, -inf }
 0x304   : > { %2034 = vmax.xlane.f32.xlu0 %v4174_v35  ;;  %v3063_v21 = vpop.f32.mrb[98].mxu1  ;;  %v4194_v41 = vsel %vm1756_vm4, %v1806_v32, -inf }
 0x305   : > { %v1809_v38 = vpop.f32.mrb[99].mxu1  ;;  %v4185_v12 = vsel %vm1759_vm3, %v3063_v21, -inf }
 0x306   : > { %2036 = vmax.xlane.f32.xlu1 %v4185_v12  ;;  %v4210_v48 = vsel %vm1757_vm5, %v1809_v38, -inf }
 0x308   : > { %2030 = vmax.xlane.f32.xlu0 %v4194_v41 }
 0x30a   : > { %v3066_v43 = vpop.f32.mrb[100].mxu1 }
 0x30b   : > { %v1822_v47 = vpop.f32.mrb[101].mxu1  ;;  %v4232_v50 = vsel %vm1762_vm7, %v3066_v43, -inf }
 0x30c   : > { %2032 = vmax.xlane.f32.xlu0 %v4210_v48  ;;  %v3067_v46 = vpop.f32.mrb[102].mxu1  ;;  %v4254_v29 = vsel %vm1760_vm9, %v1822_v47, -inf }
 0x30d   : > { %v1825_v30 = vpop.f32.mrb[103].mxu1  ;;  %v4221_v36 = vsel %vm1763_vm6, %v3067_v46, -inf }
 0x30e   : > { %2044 = vmax.xlane.f32.xlu1 %v4221_v36  ;;  %v4243_v54 = vsel %vm1761_vm8, %v1825_v30, -inf }
 0x310   : > { %2042 = vmax.xlane.f32.xlu0 %v4232_v50 }
 0x312   : > { %2040 = vmax.xlane.f32.xlu1 %v4243_v54  ;;  %v3070_v2 = vpop.f32.mrb[104].mxu1 }
 0x313   : > { %v1838_v18 = vpop.f32.mrb[105].mxu1  ;;  %v4271_v57 = vsel %vm1766_vm11, %v3070_v2, -inf }
 0x314   : > { %2038 = vmax.xlane.f32.xlu0 %v4254_v29  ;;  %v3071_v33 = vpop.f32.mrb[106].mxu1  ;;  %v4287_v61 = vsel %vm1764_vm13, %v1838_v18, -inf }
 0x315   : > { %v1841_v51 = vpop.f32.mrb[107].mxu1  ;;  %v4263_v56 = vsel %vm1767_vm10, %v3071_v33, -inf }
 0x316   : > { %2052 = vmax.xlane.f32.xlu1 %v4263_v56  ;;  %v4282_v4 = vsel %vm1765_vm12, %v1841_v51, -inf }
 0x318   : > { %2050 = vmax.xlane.f32.xlu0 %v4271_v57 }
 0x31a   : > { %2048 = vmax.xlane.f32.xlu1 %v4282_v4  ;;  %v3074_v25 = vpop.f32.mrb[108].mxu1 }
 0x31b   : > { %v1854_v59 = vpop.f32.mrb[109].mxu1  ;;  %v4294_v28 = vsel %vm1770_vm0, %v3074_v25, -inf }
 0x31c   : > { %2046 = vmax.xlane.f32.xlu0 %v4287_v61  ;;  %v3075_v27 = vpop.f32.mrb[110].mxu1  ;;  %v4311_v63 = vsel %vm1768_vm15, %v1854_v59, -inf }
 0x31d   : > { %v1857_v39 = vpop.f32.mrb[111].mxu1  ;;  %v4301_v16 = vsel %vm1771_vm1, %v3075_v27, -inf }
 0x31e   : > { %v4306_v20 = vsel %vm1769_vm14, %v1857_v39, -inf }
 0x31f   : > { %2056 = vmax.xlane.f32.xlu1 %v4306_v20 }
 0x320   : > { %2054 = vmax.xlane.f32.xlu0 %v4311_v63 }
 0x342   : > { %v3094_v55 = vpop.f32.mrb[112].mxu1 }
 0x343   : > { %v1903_v9 = vpop.f32.mrb[113].mxu1  ;;  %v4317_v3 = vsel %vm1758_vm2, %v3094_v55, -inf }
 0x344   : > { %2066 = vmax.xlane.f32.xlu0 %v4317_v3  ;;  %v3095_v11 = vpop.f32.mrb[114].mxu1  ;;  %v4323_v1 = vsel %vm1756_vm4, %v1903_v9, -inf }
 0x345   : > { %2062 = vmax.xlane.f32.xlu1 %v4323_v1  ;;  %v1906_v14 = vpop.f32.mrb[115].mxu1  ;;  %v4329_v58 = vsel %vm1759_vm3, %v3095_v11, -inf }
 0x346   : > { %v4334_v60 = vsel %vm1757_vm5, %v1906_v14, -inf }
 0x349   : > { %2068 = vmax.xlane.f32.xlu1 %v4329_v58 }
 0x34a   : > { %v3098_v62 = vpop.f32.mrb[116].mxu1 }
 0x34b   : > { %v1919_v37 = vpop.f32.mrb[117].mxu1  ;;  %v4340_v19 = vsel %vm1762_vm7, %v3098_v62, -inf }
 0x34c   : > { %2074 = vmax.xlane.f32.xlu0 %v4340_v19  ;;  %v3099_v23 = vpop.f32.mrb[118].mxu1  ;;  %v4357_v45 = vsel %vm1760_vm9, %v1919_v37, -inf }
 0x34d   : > { %2064 = vmax.xlane.f32.xlu1 %v4334_v60  ;;  %v1922_v31 = vpop.f32.mrb[119].mxu1  ;;  %v4347_v24 = vsel %vm1763_vm6, %v3099_v23, -inf }
 0x34e   : > { %v4352_v49 = vsel %vm1761_vm8, %v1922_v31, -inf }
 0x350   : > { %2070 = vmax.xlane.f32.xlu0 %v4357_v45 }
 0x351   : > { %2076 = vmax.xlane.f32.xlu1 %v4347_v24 }
 0x352   : > { %v3102_v34 = vpop.f32.mrb[120].mxu1 }
 0x353   : > { %v1935_v17 = vpop.f32.mrb[121].mxu1  ;;  %v4364_v7 = vsel %vm1766_vm11, %v3102_v34, -inf }
 0x354   : > { %2082 = vmax.xlane.f32.xlu0 %v4364_v7  ;;  %v3103_v32 = vpop.f32.mrb[122].mxu1  ;;  %v4380_v8 = vsel %vm1764_vm13, %v1935_v17, -inf }
 0x355   : > { %2072 = vmax.xlane.f32.xlu1 %v4352_v49  ;;  %v1938_v21 = vpop.f32.mrb[123].mxu1  ;;  %v4371_v13 = vsel %vm1767_vm10, %v3103_v32, -inf }
 0x356   : > { %v4376_v38 = vsel %vm1765_vm12, %v1938_v21, -inf }
 0x358   : > { %2078 = vmax.xlane.f32.xlu0 %v4380_v8 }
 0x359   : > { %2084 = vmax.xlane.f32.xlu1 %v4371_v13 }
 0x35a   : > { %v3106_v10 = vpop.f32.mrb[124].mxu1 }
 0x35b   : > { %v1951_v43 = vpop.f32.mrb[125].mxu1  ;;  %v4387_v52 = vsel %vm1770_vm0, %v3106_v10, -inf }
 0x35c   : > { %2058 = vmax.xlane.f32.xlu0 %v4294_v28  ;;  %v3107_v47 = vpop.f32.mrb[126].mxu1  ;;  %v4392_v46 = vsel %vm1768_vm15, %v1951_v43, -inf }
 0x35d   : > { %2080 = vmax.xlane.f32.xlu1 %v4376_v38  ;;  %v1954_v26 = vpop.f32.mrb[127].mxu1  ;;  %v4398_v30 = vsel %vm1771_vm1, %v3107_v47, -inf }
 0x35e   : > { %v4403_v22 = vsel %vm1769_vm14, %v1954_v26, -inf }
 0x360   : > { %2086 = vmax.xlane.f32.xlu0 %v4392_v46 }
 0x361   : > { %2060 = vmax.xlane.f32.xlu1 %v4301_v16 }
 0x364   : > { %2090 = vmax.xlane.f32.xlu0 %v4387_v52 }
 0x365   : > { %2088 = vmax.xlane.f32.xlu1 %v4403_v22 }
 0x369   : > { %2092 = vmax.xlane.f32.xlu1 %v4398_v30 }
 0x391   : > { %v2035_v44 = vpop.xlane.xlu0 %2034 }
 0x392   : > { %v2096_v40 = vsub.f32 %v4174_v35, %v2035_v44 }
 0x393   : > { %v2037_v53 = vpop.xlane.xlu1 %2036 }
 0x394   : > { %v2130_v2 = vmul.f32 1.442695, %v2096_v40  ;;  %v2097_v6 = vsub.f32 %v4185_v12, %v2037_v53 }
 0x395   : > { %v2031_v0 = vpop.xlane.xlu0 %2030 }
 0x396   : > { %3461 = vpow2.f32 %v2130_v2  ;;  %v2132_v18 = vmul.f32 1.442695, %v2097_v6  ;;  %v2094_v33 = vsub.f32 %v4194_v41, %v2031_v0 }
 0x398   : > { %3463 = vpow2.f32 %v2132_v18  ;;  %v2126_v42 = vmul.f32 1.442695, %v2094_v33 }
 0x399   : > { %v2033_v51 = vpop.xlane.xlu0 %2032 }
 0x39a   : > { %3465 = vpow2.f32 %v2126_v42  ;;  %v2095_v5 = vsub.f32 %v4210_v48, %v2033_v51 }
 0x39b   : > { %v2045_v15 = vpop.xlane.xlu1 %2044 }
 0x39c   : > { %v2128_v25 = vmul.f32 1.442695, %v2095_v5  ;;  %v2101_v59 = vsub.f32 %v4221_v36, %v2045_v15 }
 0x39d   : > { %v2043_v35 = vpop.xlane.xlu0 %2042 }
 0x39e   : > { %3467 = vpow2.f32 %v2128_v25  ;;  %v2140_v27 = vmul.f32 1.442695, %v2101_v59  ;;  %v2100_v12 = vsub.f32 %v4232_v50, %v2043_v35 }
 0x39f   : > { %v2041_v39 = vpop.xlane.xlu1 %2040 }
 0x3a0   : > { %v4416_v55 = vpop.eup %3461  ;;  %v2138_v9 = vmul.f32 1.442695, %v2100_v12  ;;  %v2099_v41 = vsub.f32 %v4243_v54, %v2041_v39  ;;  %3469 = vpow2.f32 %v2140_v27 }
 0x3a1   : > { %v2039_v11 = vpop.xlane.xlu0 %2038  ;;  %2194 = vadd.xlane.f32.xlu0 %v4416_v55 }
 0x3a2   : > { %v4420_v48 = vpop.eup %3463  ;;  %3471 = vpow2.f32 %v2138_v9  ;;  %v2136_v14 = vmul.f32 1.442695, %v2099_v41  ;;  %v2098_v36 = vsub.f32 %v4254_v29, %v2039_v11 }
 0x3a3   : > { %v2053_v62 = vpop.xlane.xlu1 %2052  ;;  %2196 = vadd.xlane.f32.xlu1 %v4420_v48 }
 0x3a4   : > { %v4424_v50 = vpop.eup %3465  ;;  %v2134_v37 = vmul.f32 1.442695, %v2098_v36  ;;  %v2105_v23 = vsub.f32 %v4263_v56, %v2053_v62  ;;  %3473 = vpow2.f32 %v2136_v14 }
 0x3a5   : > { %v2051_v54 = vpop.xlane.xlu0 %2050  ;;  %2190 = vadd.xlane.f32.xlu0 %v4424_v50 }
 0x3a6   : > { %3475 = vpow2.f32 %v2134_v37  ;;  %v2148_v31 = vmul.f32 1.442695, %v2105_v23  ;;  %v2104_v34 = vsub.f32 %v4271_v57, %v2051_v54 }
 0x3a7   : > { %v2049_v17 = vpop.xlane.xlu1 %2048 }
 0x3a8   : > { %v4429_v32 = vpop.eup %3467  ;;  %v2146_v29 = vmul.f32 1.442695, %v2104_v34  ;;  %v2103_v21 = vsub.f32 %v4282_v4, %v2049_v17  ;;  %3477 = vpow2.f32 %v2148_v31 }
 0x3a9   : > { %v2047_v10 = vpop.xlane.xlu0 %2046  ;;  %2192 = vadd.xlane.f32.xlu1 %v4429_v32 }
 0x3aa   : > { %3479 = vpow2.f32 %v2146_v29  ;;  %v2144_v56 = vmul.f32 1.442695, %v2103_v21  ;;  %v2102_v43 = vsub.f32 %v4287_v61, %v2047_v10  ;;  %v4434_v47 = vpop.eup %3469 }
 0x3ac   : > { %v4436_v26 = vpop.eup %3471  ;;  %v2142_v44 = vmul.f32 1.442695, %v2102_v43  ;;  %v2057_v57 = vpop.xlane.xlu1 %2056  ;;  %3481 = vpow2.f32 %v2144_v56 }
 0x3ad   : > { %v2107_v40 = vsub.f32 %v4306_v20, %v2057_v57  ;;  %v2055_v53 = vpop.xlane.xlu0 %2054  ;;  %2202 = vadd.xlane.f32.xlu0 %v4436_v26  ;;  %2204 = vadd.xlane.f32.xlu1 %v4434_v47 }
 0x3ae   : > { %3483 = vpow2.f32 %v2142_v44  ;;  %v2106_v4 = vsub.f32 %v4311_v63, %v2055_v53  ;;  %v4442_v2 = vpop.eup %3473 }
 0x3af   : > { %v2152_v61 = vmul.f32 1.442695, %v2107_v40 }
 0x3b0   : > { %v4444_v6 = vpop.eup %3475  ;;  %v2150_v0 = vmul.f32 1.442695, %v2106_v4 }
 0x3b1   : > { %3485 = vpow2.f32 %v2152_v61  ;;  %2198 = vadd.xlane.f32.xlu0 %v4444_v6  ;;  %2200 = vadd.xlane.f32.xlu1 %v4442_v2 }
 0x3b2   : > { %3487 = vpow2.f32 %v2150_v0  ;;  %v4448_v20 = vpop.eup %3477 }
 0x3b4   : > { %v4450_v18 = vpop.eup %3479 }
 0x3b5   : > { %2210 = vadd.xlane.f32.xlu0 %v4450_v18  ;;  %2212 = vadd.xlane.f32.xlu1 %v4448_v20 }
 0x3b6   : > { %v4454_v63 = vpop.eup %3481 }
 0x3b8   : > { %v4456_v33 = vpop.eup %3483 }
 0x3b9   : > { %2206 = vadd.xlane.f32.xlu0 %v4456_v33  ;;  %2208 = vadd.xlane.f32.xlu1 %v4454_v63 }
 0x3bb   : > { %v4460_v42 = vpop.eup %3485 }
 0x3bc   : > { %v4462_v51 = vpop.eup %3487 }
 0x3bd   : > { %2214 = vadd.xlane.f32.xlu0 %v4462_v51  ;;  %2216 = vadd.xlane.f32.xlu1 %v4460_v42 }
 0x3d1   : > { %v2067_v5 = vpop.xlane.xlu0 %2066 }
 0x3d2   : > { %v2112_v15 = vsub.f32 %v4317_v3, %v2067_v5  ;;  %v2063_v25 = vpop.xlane.xlu1 %2062 }
 0x3d3   : > { %v2110_v59 = vsub.f32 %v4323_v1, %v2063_v25 }
 0x3d4   : > { %v2162_v35 = vmul.f32 1.442695, %v2112_v15 }
 0x3d5   : > { %v2158_v27 = vmul.f32 1.442695, %v2110_v59 }
 0x3d6   : > { %3489 = vpow2.f32 %v2162_v35  ;;  %v2069_v12 = vpop.xlane.xlu1 %2068 }
 0x3d7   : > { %v2113_v39 = vsub.f32 %v4329_v58, %v2069_v12  ;;  %3491 = vpow2.f32 %v2158_v27 }
 0x3d9   : > { %v2164_v9 = vmul.f32 1.442695, %v2113_v39  ;;  %v2075_v41 = vpop.xlane.xlu0 %2074 }
 0x3da   : > { %v2116_v11 = vsub.f32 %v4340_v19, %v2075_v41  ;;  %v2065_v14 = vpop.xlane.xlu1 %2064 }
 0x3db   : > { %3493 = vpow2.f32 %v2164_v9  ;;  %v2111_v36 = vsub.f32 %v4334_v60, %v2065_v14 }
 0x3dc   : > { %v2170_v62 = vmul.f32 1.442695, %v2116_v11 }
 0x3dd   : > { %v2160_v3 = vmul.f32 1.442695, %v2111_v36  ;;  %v2071_v37 = vpop.xlane.xlu0 %2070 }
 0x3de   : > { %3495 = vpow2.f32 %v2170_v62  ;;  %v2114_v1 = vsub.f32 %v4357_v45, %v2071_v37  ;;  %v2077_v23 = vpop.xlane.xlu1 %2076 }
 0x3df   : > { %3497 = vpow2.f32 %v2160_v3  ;;  %v2117_v54 = vsub.f32 %v4347_v24, %v2077_v23 }
 0x3e0   : > { %v4473_v58 = vpop.eup %3489  ;;  %v2166_v31 = vmul.f32 1.442695, %v2114_v1 }
 0x3e1   : > { %v2172_v34 = vmul.f32 1.442695, %v2117_v54  ;;  %v2083_v17 = vpop.xlane.xlu0 %2082  ;;  %2226 = vadd.xlane.f32.xlu0 %v4473_v58  ;;  %v4478_v21 = vpop.eup %3491 }
 0x3e2   : > { %3499 = vpow2.f32 %v2166_v31  ;;  %v2120_v60 = vsub.f32 %v4364_v7, %v2083_v17  ;;  %v2073_v19 = vpop.xlane.xlu1 %2072 }
 0x3e3   : > { %3501 = vpow2.f32 %v2172_v34  ;;  %v2115_v29 = vsub.f32 %v4352_v49, %v2073_v19 }
 0x3e4   : > { %v2178_v45 = vmul.f32 1.442695, %v2120_v60 }
 0x3e5   : > { %v4480_v10 = vpop.eup %3493  ;;  %v2168_v24 = vmul.f32 1.442695, %v2115_v29  ;;  %v2079_v56 = vpop.xlane.xlu0 %2078  ;;  %2222 = vadd.xlane.f32.xlu0 %v4478_v21 }
 0x3e6   : > { %3503 = vpow2.f32 %v2178_v45  ;;  %v2118_v43 = vsub.f32 %v4380_v8, %v2079_v56  ;;  %v2085_v44 = vpop.xlane.xlu1 %2084  ;;  %2228 = vadd.xlane.f32.xlu1 %v4480_v10 }
 0x3e7   : > { %3505 = vpow2.f32 %v2168_v24  ;;  %v2121_v7 = vsub.f32 %v4371_v13, %v2085_v44 }
 0x3e8   : > { %v4486_v57 = vpop.eup %3495  ;;  %v2174_v49 = vmul.f32 1.442695, %v2118_v43 }
 0x3e9   : > { %v4488_v40 = vpop.eup %3497  ;;  %v2180_v53 = vmul.f32 1.442695, %v2121_v7  ;;  %v2059_v4 = vpop.xlane.xlu0 %2058  ;;  %2234 = vadd.xlane.f32.xlu0 %v4486_v57 }
 0x3ea   : > { %3507 = vpow2.f32 %v2174_v49  ;;  %v2108_v61 = vsub.f32 %v4294_v28, %v2059_v4  ;;  %v2081_v0 = vpop.xlane.xlu1 %2080  ;;  %2224 = vadd.xlane.f32.xlu1 %v4488_v40 }
 0x3eb   : > { %3509 = vpow2.f32 %v2180_v53  ;;  %v2119_v8 = vsub.f32 %v4376_v38, %v2081_v0 }
 0x3ec   : > { %v4494_v5 = vpop.eup %3499  ;;  %v2154_v13 = vmul.f32 1.442695, %v2108_v61 }
 0x3ed   : > { %v4496_v15 = vpop.eup %3501  ;;  %v2176_v25 = vmul.f32 1.442695, %v2119_v8  ;;  %2230 = vadd.xlane.f32.xlu0 %v4494_v5  ;;  %v2087_v59 = vpop.xlane.xlu0 %2086 }
 0x3ee   : > { %3511 = vpow2.f32 %v2154_v13  ;;  %v2122_v35 = vsub.f32 %v4392_v46, %v2087_v59  ;;  %v2061_v27 = vpop.xlane.xlu1 %2060  ;;  %2236 = vadd.xlane.f32.xlu1 %v4496_v15 }
 0x3ef   : > { %3513 = vpow2.f32 %v2176_v25  ;;  %v2109_v28 = vsub.f32 %v4301_v16, %v2061_v27 }
 0x3f0   : > { %v4502_v12 = vpop.eup %3503  ;;  %v2182_v38 = vmul.f32 1.442695, %v2122_v35 }
 0x3f1   : > { %v4504_v39 = vpop.eup %3505  ;;  %v2156_v9 = vmul.f32 1.442695, %v2109_v28  ;;  %2242 = vadd.xlane.f32.xlu0 %v4502_v12  ;;  %v2091_v41 = vpop.xlane.xlu0 %2090 }
 0x3f2   : > { %3515 = vpow2.f32 %v2182_v38  ;;  %v2124_v11 = vsub.f32 %v4387_v52, %v2091_v41  ;;  %2232 = vadd.xlane.f32.xlu1 %v4504_v39  ;;  %v2089_v46 = vpop.xlane.xlu1 %2088 }
 0x3f3   : > { %3517 = vpow2.f32 %v2156_v9  ;;  %v2123_v14 = vsub.f32 %v4403_v22, %v2089_v46 }
 0x3f4   : > { %v4510_v36 = vpop.eup %3507  ;;  %v2186_v16 = vmul.f32 1.442695, %v2124_v11 }
 0x3f5   : > { %v4512_v62 = vpop.eup %3509  ;;  %v2184_v3 = vmul.f32 1.442695, %v2123_v14  ;;  %2238 = vadd.xlane.f32.xlu0 %v4510_v36 }
 0x3f6   : > { %3519 = vpow2.f32 %v2186_v16  ;;  %2244 = vadd.xlane.f32.xlu1 %v4512_v62  ;;  %v2093_v37 = vpop.xlane.xlu1 %2092 }
 0x3f7   : > { %3521 = vpow2.f32 %v2184_v3  ;;  %v2125_v52 = vsub.f32 %v4398_v30, %v2093_v37 }
 0x3f8   : > { %v4517_v1 = vpop.eup %3511 }
 0x3f9   : > { %v4519_v23 = vpop.eup %3513  ;;  %v2188_v22 = vmul.f32 1.442695, %v2125_v52  ;;  %2218 = vadd.xlane.f32.xlu0 %v4517_v1 }
 0x3fa   : > { %2240 = vadd.xlane.f32.xlu1 %v4519_v23 }
 0x3fb   : > { %3523 = vpow2.f32 %v2188_v22 }
 0x3fc   : > { %v4523_v54 = vpop.eup %3515 }
 0x3fd   : > { %v4525_v31 = vpop.eup %3517  ;;  %2246 = vadd.xlane.f32.xlu0 %v4523_v54 }
 0x3fe   : > { %2220 = vadd.xlane.f32.xlu1 %v4525_v31 }
 0x400   : > { %v4529_v34 = vpop.eup %3519 }
 0x401   : > { %v4531_v30 = vpop.eup %3521  ;;  %2250 = vadd.xlane.f32.xlu0 %v4529_v34 }
 0x402   : > { %2248 = vadd.xlane.f32.xlu1 %v4531_v30 }
 0x405   : > { %v4535_v17 = vpop.eup %3523 }
 0x406   : > { %2252 = vadd.xlane.f32.xlu1 %v4535_v17 }
 0x42e   : > { %v2195_v60 = vpop.xlane.xlu0 %2194 }
 0x430   : > { %v2197_v19 = vpop.xlane.xlu1 %2196 }
 0x431   : > { %3525 = vrcp.f32 %v2197_v19 }
 0x432   : > { %v2191_v29 = vpop.xlane.xlu0 %2190 }
 0x433   : > { %3527 = vrcp.f32 %v2191_v29 }
 0x434   : > { %3529 = vrcp.f32 %v2195_v60 }
 0x436   : > { %v2193_v45 = vpop.xlane.xlu1 %2192 }
 0x437   : > { %3531 = vrcp.f32 %v2193_v45 }
 0x43a   : > { %v2203_v24 = vpop.xlane.xlu0 %2202  ;;  %v2205_v56 = vpop.xlane.xlu1 %2204 }
 0x43b   : > { %3533 = vrcp.f32 %v2203_v24  ;;  %v3526_v43 = vpop.eup %3525 }
 0x43c   : > { %3535 = vrcp.f32 %v2205_v56  ;;  %v2289_v61 = vmul.f32 %v3526_v43, %v4420_v48 }
 0x43d   : > { %v3528_v49 = vpop.eup %3527 }
 0x43e   : > { %v2199_v44 = vpop.xlane.xlu0 %2198  ;;  %v2201_v7 = vpop.xlane.xlu1 %2200  ;;  %v2286_v13 = vmul.f32 %v3528_v49, %v4424_v50 }
 0x43f   : > { %3537 = vrcp.f32 %v2199_v44  ;;  %v3530_v53 = vpop.eup %3529 }
 0x440   : > { %3539 = vrcp.f32 %v2201_v7  ;;  %v2288_v59 = vmul.f32 %v3530_v53, %v4416_v55 }
 0x441   : > { %v3532_v4 = vpop.eup %3531 }
 0x442   : > { %v2211_v0 = vpop.xlane.xlu0 %2210  ;;  %v2213_v8 = vpop.xlane.xlu1 %2212  ;;  %v2287_v25 = vmul.f32 %v3532_v4, %v4429_v32  ;;  %v2319_v27 = vpack.c.bf16 %v2289_v61, %v2288_v59 }
 0x443   : > { %3541 = vrcp.f32 %v2211_v0 }
 0x444   : > { %v2318_v35 = vpack.c.bf16 %v2287_v25, %v2286_v13  ;;  %3543 = vrcp.f32 %v2213_v8 }
 0x445   : > { %v3534_v28 = vpop.eup %3533 }
 0x446   : > { %v2207_v38 = vpop.xlane.xlu0 %2206  ;;  %3124 = vmatprep.mubr.bf16.mxu0 %v2318_v35  ;;  %v2209_v9 = vpop.xlane.xlu1 %2208  ;;  %v2292_v55 = vmul.f32 %v3534_v28, %v4436_v26 }
 0x447   : > { %v3536_v41 = vpop.eup %3535  ;;  %3545 = vrcp.f32 %v2207_v38  ;;  %3125 = vmatmul.mubr.bf16.vlgmr.msra.gmra.mrb[64].mxu0 %v2319_v27 }
 0x448   : > { %3547 = vrcp.f32 %v2209_v9  ;;  %v2293_v14 = vmul.f32 %v3536_v41, %v4434_v47 }
 0x449   : > { %v3538_v48 = vpop.eup %3537 }
 0x44a   : > { %v3540_v11 = vpop.eup %3539  ;;  %v2215_v46 = vpop.xlane.xlu0 %2214  ;;  %v2290_v32 = vmul.f32 %v3538_v48, %v4444_v6  ;;  %v2321_v52 = vpack.c.bf16 %v2293_v14, %v2292_v55 }
 0x44b   : > { %v2217_v50 = vpop.xlane.xlu1 %2216  ;;  %3549 = vrcp.f32 %v2215_v46  ;;  %v2291_v16 = vmul.f32 %v3540_v11, %v4442_v2 }
 0x44c   : > { %3551 = vrcp.f32 %v2217_v50 }
 0x44d   : > { %v2320_v3 = vpack.c.bf16 %v2291_v16, %v2290_v32  ;;  %v3542_v37 = vpop.eup %3541 }
 0x44e   : > { %v3544_v22 = vpop.eup %3543  ;;  %v2296_v6 = vmul.f32 %v3542_v37, %v4450_v18 }
 0x44f   : > { %3128 = vmatprep.mubr.bf16.mxu0 %v2320_v3  ;;  %v2297_v26 = vmul.f32 %v3544_v22, %v4448_v20 }
 0x450   : > { %3129 = vmatmul.mubr.bf16.gmra.mrb[68].mxu0 %v2321_v52 }
 0x451   : > { %v3546_v60 = vpop.eup %3545  ;;  %v2323_v56 = vpack.c.bf16 %v2297_v26, %v2296_v6 }
 0x452   : > { %v3548_v19 = vpop.eup %3547  ;;  %v2294_v29 = vmul.f32 %v3546_v60, %v4456_v33 }
 0x453   : > { %v2295_v47 = vmul.f32 %v3548_v19, %v4454_v63 }
 0x455   : > { %v3550_v45 = vpop.eup %3549  ;;  %v2322_v24 = vpack.c.bf16 %v2295_v47, %v2294_v29 }
 0x456   : > { %v3552_v2 = vpop.eup %3551  ;;  %v2298_v43 = vmul.f32 %v3550_v45, %v4462_v51 }
 0x457   : > { %3132 = vmatprep.mubr.bf16.mxu0 %v2322_v24  ;;  %v2299_v44 = vmul.f32 %v3552_v2, %v4460_v42 }
 0x458   : > { %3133 = vmatmul.mubr.bf16.gmra.mrb[72].mxu0 %v2323_v56 }
 0x459   : > { %v2324_v7 = vpack.c.bf16 %v2299_v44, %v2298_v43 }
 0x45b   : > { %3136 = vmatprep.mubr.bf16.mxu0 %v2324_v7 }
 0x46e   : > { %v2227_v49 = vpop.xlane.xlu0 %2226 }
 0x472   : > { %v2223_v33 = vpop.xlane.xlu0 %2222 }
 0x473   : > { %v2229_v53 = vpop.xlane.xlu1 %2228 }
 0x474   : > { %3553 = vrcp.f32 %v2229_v53 }
 0x475   : > { %3555 = vrcp.f32 %v2223_v33 }
 0x476   : > { %v2235_v20 = vpop.xlane.xlu0 %2234  ;;  %3557 = vrcp.f32 %v2227_v49 }
 0x477   : > { %v2225_v18 = vpop.xlane.xlu1 %2224 }
 0x478   : > { %3559 = vrcp.f32 %v2225_v18 }
 0x47a   : > { %v2231_v63 = vpop.xlane.xlu0 %2230 }
 0x47b   : > { %v2237_v4 = vpop.xlane.xlu1 %2236 }
 0x47c   : > { %3561 = vrcp.f32 %v2237_v4 }
 0x47d   : > { %3563 = vrcp.f32 %v2231_v63 }
 0x47e   : > { %v2243_v51 = vpop.xlane.xlu0 %2242  ;;  %v3554_v61 = vpop.eup %3553  ;;  %3565 = vrcp.f32 %v2235_v20 }
 0x47f   : > { %v2233_v42 = vpop.xlane.xlu1 %2232  ;;  %v3556_v0 = vpop.eup %3555  ;;  %v2305_v25 = vmul.f32 %v3554_v61, %v4480_v10 }
 0x480   : > { %3567 = vrcp.f32 %v2233_v42  ;;  %v3558_v8 = vpop.eup %3557  ;;  %v2302_v27 = vmul.f32 %v3556_v0, %v4478_v21 }
 0x481   : > { %v2304_v38 = vmul.f32 %v3558_v8, %v4473_v58 }
 0x482   : > { %v3560_v13 = vpop.eup %3559  ;;  %v2239_v59 = vpop.xlane.xlu0 %2238 }
 0x483   : > { %v2245_v35 = vpop.xlane.xlu1 %2244  ;;  %v2303_v28 = vmul.f32 %v3560_v13, %v4488_v40  ;;  %v2327_v48 = vpack.c.bf16 %v2305_v25, %v2304_v38 }
 0x484   : > { %3569 = vrcp.f32 %v2245_v35 }
 0x485   : > { %v2326_v9 = vpack.c.bf16 %v2303_v28, %v2302_v27  ;;  %3571 = vrcp.f32 %v2239_v59 }
 0x486   : > { %v2219_v41 = vpop.xlane.xlu0 %2218  ;;  %v3562_v11 = vpop.eup %3561  ;;  %3573 = vrcp.f32 %v2243_v51 }
 0x487   : > { %3156 = vmatprep.mubr.bf16.mxu1 %v2326_v9  ;;  %v2241_v46 = vpop.xlane.xlu1 %2240  ;;  %v3564_v50 = vpop.eup %3563  ;;  %v2309_v40 = vmul.f32 %v3562_v11, %v4496_v15 }
 0x488   : > { %3575 = vrcp.f32 %v2241_v46  ;;  %3157 = vmatmul.mubr.bf16.vlgmr.msra.gmra.mrb[128].mxu1 %v2327_v48  ;;  %v3566_v10 = vpop.eup %3565  ;;  %v2306_v58 = vmul.f32 %v3564_v50, %v4494_v5 }
 0x489   : > { %3577 = vrcp.f32 %v2219_v41  ;;  %v2308_v16 = vmul.f32 %v3566_v10, %v4486_v57 }
 0x48a   : > { %v3568_v32 = vpop.eup %3567  ;;  %v2247_v21 = vpop.xlane.xlu0 %2246 }
 0x48b   : > { %v2221_v55 = vpop.xlane.xlu1 %2220  ;;  %v2307_v14 = vmul.f32 %v3568_v32, %v4504_v39  ;;  %v2329_v37 = vpack.c.bf16 %v2309_v40, %v2308_v16 }
 0x48c   : > { %3579 = vrcp.f32 %v2221_v55 }
 0x48d   : > { %v2328_v3 = vpack.c.bf16 %v2307_v14, %v2306_v58  ;;  %3581 = vrcp.f32 %v2247_v21 }
 0x48e   : > { %v3570_v52 = vpop.eup %3569  ;;  %v2251_v22 = vpop.xlane.xlu0 %2250 }
 0x48f   : > { %3160 = vmatprep.mubr.bf16.mxu1 %v2328_v3  ;;  %v2249_v60 = vpop.xlane.xlu1 %2248  ;;  %v3572_v19 = vpop.eup %3571  ;;  %v2313_v5 = vmul.f32 %v3570_v52, %v4512_v62 }
 0x490   : > { %3583 = vrcp.f32 %v2249_v60  ;;  %3161 = vmatmul.mubr.bf16.gmra.mrb[132].mxu1 %v2329_v37  ;;  %v3574_v29 = vpop.eup %3573  ;;  %v2310_v39 = vmul.f32 %v3572_v19, %v4510_v36 }
 0x491   : > { %3585 = vrcp.f32 %v2251_v22  ;;  %v2312_v47 = vmul.f32 %v3574_v29, %v4502_v12 }
 0x492   : > { %v3576_v15 = vpop.eup %3575 }
 0x493   : > { %v2253_v6 = vpop.xlane.xlu1 %2252  ;;  %v2311_v57 = vmul.f32 %v3576_v15, %v4519_v23  ;;  %v3578_v26 = vpop.eup %3577  ;;  %v2331_v2 = vpack.c.bf16 %v2313_v5, %v2312_v47 }
 0x494   : > { %3587 = vrcp.f32 %v2253_v6  ;;  %v2300_v56 = vmul.f32 %v3578_v26, %v4517_v1 }
 0x495   : > { %v2330_v45 = vpack.c.bf16 %v2311_v57, %v2310_v39 }
 0x496   : > { %v3580_v24 = vpop.eup %3579 }
 0x497   : > { %3164 = vmatprep.mubr.bf16.mxu1 %v2330_v45  ;;  %v2301_v43 = vmul.f32 %v3580_v24, %v4525_v31  ;;  %v3582_v44 = vpop.eup %3581 }
 0x498   : > { %3165 = vmatmul.mubr.bf16.gmra.mrb[136].mxu1 %v2331_v2  ;;  %v2314_v36 = vmul.f32 %v3582_v44, %v4523_v54 }
 0x499   : > { %v2325_v62 = vpack.c.bf16 %v2301_v43, %v2300_v56 }
 0x49a   : > { %v3584_v7 = vpop.eup %3583 }
 0x49b   : > { %3137 = vmatmul.mubr.bf16.gmra.mrb[76].mxu0 %v2325_v62  ;;  %v2315_v23 = vmul.f32 %v3584_v7, %v4531_v30  ;;  %v3586_v49 = vpop.eup %3585 }
 0x49c   : > { %v2316_v53 = vmul.f32 %v3586_v49, %v4529_v34 }
 0x49d   : > { %v2332_v12 = vpack.c.bf16 %v2315_v23, %v2314_v36 }
 0x49e   : > { %v3588_v33 = vpop.eup %3587 }
 0x49f   : > { %3168 = vmatprep.mubr.bf16.mxu1 %v2332_v12  ;;  %v2317_v1 = vmul.f32 %v3588_v33, %v4535_v17 }
 0x4a1   : > { %v2333_v20 = vpack.c.bf16 %v2317_v1, %v2316_v53 }
 0x4a3   : > { %3169 = vmatmul.mubr.bf16.gmra.mrb[140].mxu1 %v2333_v20 }
 0x51a   : > { %v3126_v31 = vpop.f32.mrb[64].mxu0 }
 0x51b   : > { %2530 = vst [vmem:[%s4571_s17 + $0x10] sm:$0xff] %v3126_v31  ;;  %v2368_v54 = vpop.f32.mrb[65].mxu0 }
 0x51c   : > { %2528 = vst [vmem:[%s4571_s17] sm:$0xff] %v2368_v54  ;;  %v3127_v34 = vpop.f32.mrb[66].mxu0 }
 0x51d   : > { %2531 = vst [vmem:[%s4571_s17 + $0x18] sm:$0xff] %v3127_v34  ;;  %v2371_v30 = vpop.f32.mrb[67].mxu0 }
 0x51e   : > { %2529 = vst [vmem:[%s4571_s17 + $0x8] sm:$0xff] %v2371_v30 }
 0x523   : > { %v3130_v17 = vpop.f32.mrb[68].mxu0 }
 0x524   : > { %2534 = vst [vmem:[%s4571_s17 + $0x30] sm:$0xff] %v3130_v17  ;;  %v2384_v18 = vpop.f32.mrb[69].mxu0 }
 0x525   : > { %2532 = vst [vmem:[%s4571_s17 + $0x20] sm:$0xff] %v2384_v18  ;;  %v3131_v63 = vpop.f32.mrb[70].mxu0 }
 0x526   : > { %2535 = vst [vmem:[%s4571_s17 + $0x38] sm:$0xff] %v3131_v63  ;;  %v2387_v4 = vpop.f32.mrb[71].mxu0 }
 0x527   : > { %2533 = vst [vmem:[%s4571_s17 + $0x28] sm:$0xff] %v2387_v4 }
 0x52b   : > { %v3134_v51 = vpop.f32.mrb[72].mxu0 }
 0x52c   : > { %2538 = vst [vmem:[%s4571_s17 + $0x50] sm:$0xff] %v3134_v51  ;;  %v2400_v61 = vpop.f32.mrb[73].mxu0 }
 0x52d   : > { %2536 = vst [vmem:[%s4571_s17 + $0x40] sm:$0xff] %v2400_v61  ;;  %v3135_v42 = vpop.f32.mrb[74].mxu0 }
 0x52e   : > { %2539 = vst [vmem:[%s4571_s17 + $0x58] sm:$0xff] %v3135_v42  ;;  %v2403_v0 = vpop.f32.mrb[75].mxu0 }
 0x52f   : > { %2537 = vst [vmem:[%s4571_s17 + $0x48] sm:$0xff] %v2403_v0 }
 0x55b   : > { %v3158_v8 = vpop.f32.mrb[128].mxu1 }
 0x55c   : > { %2546 = vst [vmem:[%s4571_s17 + $0x90] sm:$0xff] %v3158_v8  ;;  %v2465_v13 = vpop.f32.mrb[129].mxu1 }
 0x55d   : > { %2544 = vst [vmem:[%s4571_s17 + $0x80] sm:$0xff] %v2465_v13  ;;  %v3159_v25 = vpop.f32.mrb[130].mxu1 }
 0x55e   : > { %2547 = vst [vmem:[%s4571_s17 + $0x98] sm:$0xff] %v3159_v25  ;;  %v2468_v59 = vpop.f32.mrb[131].mxu1 }
 0x55f   : > { %2545 = vst [vmem:[%s4571_s17 + $0x88] sm:$0xff] %v2468_v59 }
 0x563   : > { %v3162_v35 = vpop.f32.mrb[132].mxu1 }
 0x564   : > { %2550 = vst [vmem:[%s4571_s17 + $0xb0] sm:$0xff] %v3162_v35  ;;  %v2481_v27 = vpop.f32.mrb[133].mxu1 }
 0x565   : > { %2548 = vst [vmem:[%s4571_s17 + $0xa0] sm:$0xff] %v2481_v27  ;;  %v3163_v28 = vpop.f32.mrb[134].mxu1 }
 0x566   : > { %2551 = vst [vmem:[%s4571_s17 + $0xb8] sm:$0xff] %v3163_v28  ;;  %v2484_v38 = vpop.f32.mrb[135].mxu1 }
 0x567   : > { %2549 = vst [vmem:[%s4571_s17 + $0xa8] sm:$0xff] %v2484_v38 }
 0x56b   : > { %v3166_v9 = vpop.f32.mrb[136].mxu1 }
 0x56c   : > { %2554 = vst [vmem:[%s4571_s17 + $0xd0] sm:$0xff] %v3166_v9  ;;  %v2497_v41 = vpop.f32.mrb[137].mxu1 }
 0x56d   : > { %2552 = vst [vmem:[%s4571_s17 + $0xc0] sm:$0xff] %v2497_v41  ;;  %v3167_v48 = vpop.f32.mrb[138].mxu1 }
 0x56e   : > { %2555 = vst [vmem:[%s4571_s17 + $0xd8] sm:$0xff] %v3167_v48  ;;  %v3138_v11 = vpop.f32.mrb[76].mxu0  ;;  %v2500_v46 = vpop.f32.mrb[139].mxu1 }
 0x56f   : > { %2542 = vst [vmem:[%s4571_s17 + $0x70] sm:$0xff] %v3138_v11  ;;  %2553 = vst [vmem:[%s4571_s17 + $0xc8] sm:$0xff] %v2500_v46  ;;  %v2416_v50 = vpop.f32.mrb[77].mxu0 }
 0x570   : > { %2540 = vst [vmem:[%s4571_s17 + $0x60] sm:$0xff] %v2416_v50  ;;  %v3139_v10 = vpop.f32.mrb[78].mxu0 }
 0x571   : > { %2543 = vst [vmem:[%s4571_s17 + $0x78] sm:$0xff] %v3139_v10  ;;  %v2419_v32 = vpop.f32.mrb[79].mxu0 }
 0x572   : > { %2541 = vst [vmem:[%s4571_s17 + $0x68] sm:$0xff] %v2419_v32 }
 0x576   : > { %v3170_v21 = vpop.f32.mrb[140].mxu1 }
 0x577   : > { %2558 = vst [vmem:[%s4571_s17 + $0xf0] sm:$0xff] %v3170_v21  ;;  %v2513_v40 = vpop.f32.mrb[141].mxu1 }
 0x578   : > { %2556 = vst [vmem:[%s4571_s17 + $0xe0] sm:$0xff] %v2513_v40  ;;  %v3171_v55 = vpop.f32.mrb[142].mxu1 }
 0x579   : > { %2559 = vst [vmem:[%s4571_s17 + $0xf8] sm:$0xff] %v3171_v55  ;;  %v2516_v58 = vpop.f32.mrb[143].mxu1 }
 0x57a   : > { %2557 = vst [vmem:[%s4571_s17 + $0xe8] sm:$0xff] %v2516_v58 }
 0x57b   : > { %3660 = shalt.err (!%p3657_p7)
}
 0x57c   : > { %s3661_s18 = scalar_lea.hbm %s4607_s27, 4096  ;;  %s3665_s23 = scalar_lea.hbm %s4658_s2, 8192 }
 0x57d   : > { %p3662_p9 = scmp.ne.s32.totalorder %s4607_s27, %s3661_s18  ;;  %p3666_p5 = scmp.lt.u32.totalorder %s4607_s27, %s4658_s2 }
 0x57e   : > { %p3667_p13 = scmp.lt.u32.totalorder %s3665_s23, %s3661_s18  ;;  %p3669_p4 = scmp.lt.u32.totalorder %s3661_s18, %s4607_s27 }
 0x57f   : > { %p3663_p1 = pnand %p3662_p9, %p3836_p12 }
 0x580   : > { %p3668_p2 = por %p3667_p13, %p3666_p5 }
 0x581   : > { %p3664_p0 = pneg %p3663_p1 }
 0x582   : > { %p3670_p6 = por %p3669_p4, %p3668_p2 }
 0x584   : > { %p3671_p8 = pnand %p3670_p6, %p3664_p0 }
 0x586   : > { %3674 = shalt.err (!%p3671_p8)
}
 0x587   : > { %s3725_s3 = smov 128   ;;  %s3726_s15 = smov 8  }
 0x588   : > { %3245 = dma.vmem_to_hbm [thread:$0]  (%p3836_p12), %s4609_s5, 4096, %s4607_s27, %s2561_s13, %s3725_s3, %s3725_s3, %s3726_s15  }
 0x589 PF: > { %s2590_s17 = sand.u32 1, %s3705_s9   ;;  %p4673_p10 = scmp.ne.s32.totalorder %s4663_s16, 0 }
 0x58a   : > { %p4674_p11 = scmp.ge.s32.totalorder %s3717_s12, 2  ;;  %s2591_s4 = scalar_lea.sflag [#allocation4], %s2590_s17 }
 0x58c   : > { %p3256_p3 = pnand %p4674_p11, %p4673_p10 }
 0x58e   : > { %3700 = dma.done.wait (!%p3256_p3), %s2591_s4, 4096  }
 0x58f   : > { %3702 = vsyncadd (!%p3256_p3), %s2591_s4, 4294963200  ;;  %p16_p7 = scmp.ge.s32.totalorder %s3798_s21, 4   ;;  %s4675_s9 = smov %s3709_s10 }
 0x590   : > { %s4676_s10 = smov %s3713_s11  ;;  %s4677_s11 = smov %s3832_s8 }
 0x591   : > { %s4678_s12 = smov %s3798_s21  ;;  %18 = sbr.rel (!%p16_p7) target bundleno = 6 (0x6), region = 77 }
 0x598   :  { %2596 = vsyncpa [#allocation3], 1 }
 0x599   :  { %2598 = vsyncpa [#allocation3 + $0x1], 1 }
 0x59a   :  { %2599 = vsyncpa [#allocation6], 1 }
 0x59b   :  { %2600 = vsyncpa [#allocation4], 1 }
 0x59c   :  { %2602 = vsyncpa [#allocation4 + $0x1], 1 }

</bundles_post_ra>
